<compile_context>
chip_gen: v7x
topology: tpu7x:2x2x1
jax: 0.10.0
libtpu: 0.0.40
codegen_flags: <defaults>
</compile_context>

<pallas_src>
import math

import jax
import jax.numpy as jnp
from jax.experimental import pallas as pl
from jax.experimental.pallas import tpu as pltpu

# ---------------- config (small, consistent with the module) ----------------
B = 2          # batch
T = 8          # seq length
C = 32         # n_embed
N_HEADS = 4    # n_heads
HD = C // N_HEADS
BT = B * T
LN_EPS = 1e-5
NEG_INF = -1e30


# ------------------------------ Pallas kernel -------------------------------
def _layernorm(h, gamma, beta):
    # h: (BT, C); gamma/beta: (1, C)  -- stats kept in f32 (VPU/EUP friendly).
    mu = jnp.mean(h, axis=-1, keepdims=True)
    var = jnp.mean((h - mu) ** 2, axis=-1, keepdims=True)
    return (h - mu) * jax.lax.rsqrt(var + LN_EPS) * gamma + beta


def _gelu_tanh(x):
    # GELU(approximate='tanh'): 0.5*x*(1+tanh(sqrt(2/pi)*(x+0.044715*x^3)))
    c = 0.7978845608028654  # sqrt(2/pi)
    return 0.5 * x * (1.0 + jnp.tanh(c * (x + 0.044715 * x * x * x)))


def block_kernel(x_ref,
                 ln1g_ref, ln1b_ref,
                 wq_ref, bq_ref, wk_ref, bk_ref, wv_ref, bv_ref,
                 wo_ref, bo_ref,
                 ln2g_ref, ln2b_ref,
                 wfc_ref, bfc_ref,
                 wp_ref, bp_ref,
                 o_ref):
    x = x_ref[...]                                   # (B*T, C)

    # ---- attention branch ----
    h1 = _layernorm(x, ln1g_ref[...], ln1b_ref[...])

    scale = 1.0 / math.sqrt(HD)
    # Causal mask built once, directly at (B, T, T) so jnp.where needs no
    # awkward broadcasts.
    row = jax.lax.broadcasted_iota(jnp.int32, (B, T, T), 1)
    col = jax.lax.broadcasted_iota(jnp.int32, (B, T, T), 2)
    causal = col <= row

    attn = jnp.zeros((BT, C), jnp.float32)
    for h in range(N_HEADS):  # static & tiny; weights per head are pre-split
        # Per-head projections: (BT, C) @ (C, HD) -> (BT, HD).  No lane slicing.
        qh = jnp.dot(h1, wq_ref[h], preferred_element_type=jnp.float32) + bq_ref[h]
        kh = jnp.dot(h1, wk_ref[h], preferred_element_type=jnp.float32) + bk_ref[h]
        vh = jnp.dot(h1, wv_ref[h], preferred_element_type=jnp.float32) + bv_ref[h]
        # Leading-dim split (free, no relayout): (BT, HD) -> (B, T, HD)
        qh = qh.reshape(B, T, HD)
        kh = kh.reshape(B, T, HD)
        vh = vh.reshape(B, T, HD)

        # Batched over B with the canonical TPU einsum pattern.
        s = jnp.einsum('bqd,bkd->bqk', qh, kh,
                       preferred_element_type=jnp.float32) * scale
        s = jnp.where(causal, s, NEG_INF)
        s = s - jnp.max(s, axis=-1, keepdims=True)
        p = jnp.exp(s)
        p = p * pl.reciprocal(jnp.sum(p, axis=-1, keepdims=True), approx=True)
        oh = jnp.einsum('bqk,bkd->bqd', p, vh,
                        preferred_element_type=jnp.float32)     # (B, T, HD)

        # Fold this head straight through the output projection (accumulate
        # instead of lane-concatenating heads): (BT, HD) @ (HD, C).
        attn = attn + jnp.dot(oh.reshape(BT, HD), wo_ref[h],
                              preferred_element_type=jnp.float32)

    x2 = x + attn + bo_ref[...]                      # residual 1

    # ---- MLP branch ----
    h2 = _layernorm(x2, ln2g_ref[...], ln2b_ref[...])
    fc = jnp.dot(h2, wfc_ref[...], preferred_element_type=jnp.float32) + bfc_ref[...]
    act = _gelu_tanh(fc)
    mlp = jnp.dot(act, wp_ref[...], preferred_element_type=jnp.float32) + bp_ref[...]

    o_ref[...] = x2 + mlp                            # residual 2


# ------------------------------ wrapper --------------------------------------
def gpt2_block(x, params):
    (ln1g, ln1b, wqkv, bqkv, wo, bo, ln2g, ln2b, wfc, bfc, wp, bp) = params

    # Wrapper-side (free) parameter re-layout: split the fused qkv projection
    # into per-head stacked slabs so the kernel never slices lanes.
    #   wq/wk/wv: (H, C, HD),  bq/bk/bv: (H, 1, HD),  wo_s: (H, HD, C)
    wq = wqkv[:, 0 * C:1 * C].reshape(C, N_HEADS, HD).transpose(1, 0, 2)
    wk = wqkv[:, 1 * C:2 * C].reshape(C, N_HEADS, HD).transpose(1, 0, 2)
    wv = wqkv[:, 2 * C:3 * C].reshape(C, N_HEADS, HD).transpose(1, 0, 2)
    bq = bqkv[:, 0 * C:1 * C].reshape(N_HEADS, 1, HD)
    bk = bqkv[:, 1 * C:2 * C].reshape(N_HEADS, 1, HD)
    bv = bqkv[:, 2 * C:3 * C].reshape(N_HEADS, 1, HD)
    wo_s = wo.reshape(N_HEADS, HD, C)

    # Flatten batch+seq so every linear / LN is a clean 2-D tile.
    x2d = x.reshape(BT, C)

    args = (x2d, ln1g, ln1b, wq, bq, wk, bk, wv, bv, wo_s, bo,
            ln2g, ln2b, wfc, bfc, wp, bp)

    def full(a):
        nd = a.ndim
        return pl.BlockSpec(a.shape, lambda i, _nd=nd: (0,) * _nd)

    out2d = pl.pallas_call(
        block_kernel,
        out_shape=jax.ShapeDtypeStruct((BT, C), jnp.float32),
        grid_spec=pltpu.PrefetchScalarGridSpec(
            num_scalar_prefetch=0,
            grid=(1,),                         # single invocation: no per-batch grid loop
            in_specs=[full(a) for a in args],
            out_specs=pl.BlockSpec((BT, C), lambda i: (0, 0)),
        ),
        compiler_params=pltpu.CompilerParams(
            dimension_semantics=("arbitrary",)),
    )(*args)

    return out2d.reshape(B, T, C)


# --------------------------- pure-JAX reference -------------------------------
def gpt2_block_ref(x, params):
    (ln1g, ln1b, wqkv, bqkv, wo, bo, ln2g, ln2b, wfc, bfc, wp, bp) = params

    def ln(h, g, b):
        mu = jnp.mean(h, axis=-1, keepdims=True)
        var = jnp.mean((h - mu) ** 2, axis=-1, keepdims=True)
        return (h - mu) / jnp.sqrt(var + LN_EPS) * g + b

    h1 = ln(x, ln1g, ln1b)
    qkv = h1 @ wqkv + bqkv
    q, k, v = jnp.split(qkv, 3, axis=-1)
    q = q.reshape(B, T, N_HEADS, HD).transpose(0, 2, 1, 3)
    k = k.reshape(B, T, N_HEADS, HD).transpose(0, 2, 1, 3)
    v = v.reshape(B, T, N_HEADS, HD).transpose(0, 2, 1, 3)
    s = jnp.einsum("bhqd,bhkd->bhqk", q, k) / math.sqrt(HD)
    mask = jnp.tril(jnp.ones((T, T), dtype=bool))
    s = jnp.where(mask, s, -jnp.inf)
    p = jax.nn.softmax(s, axis=-1)
    o = jnp.einsum("bhqk,bhkd->bhqd", p, v)
    o = o.transpose(0, 2, 1, 3).reshape(B, T, C)
    attn = o @ wo + bo
    x2 = x + attn
    h2 = ln(x2, ln2g, ln2b)
    fc = h2 @ wfc + bfc
    act = 0.5 * fc * (1.0 + jnp.tanh(0.7978845608028654 * (fc + 0.044715 * fc ** 3)))
    return x2 + (act @ wp + bp)


# ------------------------------ main ------------------------------------------
if __name__ == "__main__":
    key = jax.random.PRNGKey(0)
    ks = jax.random.split(key, 8)

    x = jax.random.normal(ks[0], (B, T, C), dtype=jnp.float32)

    # Deterministic synthetic parameters (GPT-2-ish init: N(0, 0.02), zero bias,
    # LayerNorm gamma=1 / beta=0). Biases / LN params stored as (1, N) rows so
    # they broadcast cleanly against (BT, N) tiles inside the kernel.
    std = 0.02
    ln1g = jnp.ones((1, C), jnp.float32)
    ln1b = jnp.zeros((1, C), jnp.float32)
    ln2g = jnp.ones((1, C), jnp.float32)
    ln2b = jnp.zeros((1, C), jnp.float32)
    wqkv = std * jax.random.normal(ks[1], (C, 3 * C), dtype=jnp.float32)
    bqkv = jnp.zeros((1, 3 * C), jnp.float32)
    wo = std * jax.random.normal(ks[2], (C, C), dtype=jnp.float32)
    bo = jnp.zeros((1, C), jnp.float32)
    wfc = std * jax.random.normal(ks[3], (C, 4 * C), dtype=jnp.float32)
    bfc = jnp.zeros((1, 4 * C), jnp.float32)
    wp = std * jax.random.normal(ks[4], (4 * C, C), dtype=jnp.float32)
    bp = jnp.zeros((1, C), jnp.float32)

    params = (ln1g, ln1b, wqkv, bqkv, wo, bo, ln2g, ln2b, wfc, bfc, wp, bp)

    out = gpt2_block(x, params)
    out = jax.block_until_ready(out)

    ref = gpt2_block_ref(x, params)
    assert out.shape == (B, T, C)
    # Tolerance slightly loosened vs 1e-3 to cover the EUP approximate
    # reciprocal used in the softmax denominator.
    assert jnp.allclose(out, ref, atol=5e-3, rtol=5e-3), "mismatch vs JAX reference"

    print("KERNEL_OK")
</pallas_src>

<mosaic_0001>
module attributes {stable_mosaic.version = 11 : i64} {
  func.func @block_kernel(%arg0: i32, %arg1: memref<16x32xf32, #tpu.memory_space<vmem>>, %arg2: memref<1x32xf32, #tpu.memory_space<vmem>>, %arg3: memref<1x32xf32, #tpu.memory_space<vmem>>, %arg4: memref<4x32x8xf32, #tpu.memory_space<vmem>>, %arg5: memref<4x1x8xf32, #tpu.memory_space<vmem>>, %arg6: memref<4x32x8xf32, #tpu.memory_space<vmem>>, %arg7: memref<4x1x8xf32, #tpu.memory_space<vmem>>, %arg8: memref<4x32x8xf32, #tpu.memory_space<vmem>>, %arg9: memref<4x1x8xf32, #tpu.memory_space<vmem>>, %arg10: memref<4x8x32xf32, #tpu.memory_space<vmem>>, %arg11: memref<1x32xf32, #tpu.memory_space<vmem>>, %arg12: memref<1x32xf32, #tpu.memory_space<vmem>>, %arg13: memref<1x32xf32, #tpu.memory_space<vmem>>, %arg14: memref<32x128xf32, #tpu.memory_space<vmem>>, %arg15: memref<1x128xf32, #tpu.memory_space<vmem>>, %arg16: memref<128x32xf32, #tpu.memory_space<vmem>>, %arg17: memref<1x32xf32, #tpu.memory_space<vmem>>, %arg18: memref<16x32xf32, #tpu.memory_space<vmem>>) attributes {dimension_semantics = [#tpu.dimension_semantics<arbitrary>], iteration_bounds = array<i64: 1>, scalar_prefetch = 0 : i64, scratch_operands = 0 : i64, tpu.core_type = #tpu.core_type<tc>, window_params = [{pipeline_mode = #tpu.pipeline_mode<synchronous>, transform_indices = @transform_0, window_bounds = array<i64: 16, 32>}, {pipeline_mode = #tpu.pipeline_mode<synchronous>, transform_indices = @transform_1, window_bounds = array<i64: 1, 32>}, {pipeline_mode = #tpu.pipeline_mode<synchronous>, transform_indices = @transform_2, window_bounds = array<i64: 1, 32>}, {pipeline_mode = #tpu.pipeline_mode<synchronous>, transform_indices = @transform_3, window_bounds = array<i64: 4, 32, 8>}, {pipeline_mode = #tpu.pipeline_mode<synchronous>, transform_indices = @transform_4, window_bounds = array<i64: 4, 1, 8>}, {pipeline_mode = #tpu.pipeline_mode<synchronous>, transform_indices = @transform_5, window_bounds = array<i64: 4, 32, 8>}, {pipeline_mode = #tpu.pipeline_mode<synchronous>, transform_indices = @transform_6, window_bounds = array<i64: 4, 1, 8>}, {pipeline_mode = #tpu.pipeline_mode<synchronous>, transform_indices = @transform_7, window_bounds = array<i64: 4, 32, 8>}, {pipeline_mode = #tpu.pipeline_mode<synchronous>, transform_indices = @transform_8, window_bounds = array<i64: 4, 1, 8>}, {pipeline_mode = #tpu.pipeline_mode<synchronous>, transform_indices = @transform_9, window_bounds = array<i64: 4, 8, 32>}, {pipeline_mode = #tpu.pipeline_mode<synchronous>, transform_indices = @transform_10, window_bounds = array<i64: 1, 32>}, {pipeline_mode = #tpu.pipeline_mode<synchronous>, transform_indices = @transform_11, window_bounds = array<i64: 1, 32>}, {pipeline_mode = #tpu.pipeline_mode<synchronous>, transform_indices = @transform_12, window_bounds = array<i64: 1, 32>}, {pipeline_mode = #tpu.pipeline_mode<synchronous>, transform_indices = @transform_13, window_bounds = array<i64: 32, 128>}, {pipeline_mode = #tpu.pipeline_mode<synchronous>, transform_indices = @transform_14, window_bounds = array<i64: 1, 128>}, {pipeline_mode = #tpu.pipeline_mode<synchronous>, transform_indices = @transform_15, window_bounds = array<i64: 128, 32>}, {pipeline_mode = #tpu.pipeline_mode<synchronous>, transform_indices = @transform_16, window_bounds = array<i64: 1, 32>}, {pipeline_mode = #tpu.pipeline_mode<synchronous>, transform_indices = @transform_17, window_bounds = array<i64: 16, 32>}]} {
    %c0 = arith.constant 0 : index
    %c0_0 = arith.constant 0 : index
    %0 = vector.load %arg1[%c0, %c0_0] : memref<16x32xf32, #tpu.memory_space<vmem>>, vector<16x32xf32>
    %c0_1 = arith.constant 0 : index
    %c0_2 = arith.constant 0 : index
    %1 = vector.load %arg2[%c0_1, %c0_2] : memref<1x32xf32, #tpu.memory_space<vmem>>, vector<1x32xf32>
    %c0_3 = arith.constant 0 : index
    %c0_4 = arith.constant 0 : index
    %2 = vector.load %arg3[%c0_3, %c0_4] : memref<1x32xf32, #tpu.memory_space<vmem>>, vector<1x32xf32>
    %cst = arith.constant dense<0.000000e+00> : vector<16xf32>
    %3 = vector.multi_reduction <add>, %0, %cst [1] : vector<16x32xf32> to vector<16xf32>
    %4 = vector.shape_cast %3 : vector<16xf32> to vector<16x1xf32>
    %cst_5 = arith.constant 3.200000e+01 : f32
    %5 = vector.broadcast %cst_5 : f32 to vector<16x1xf32>
    %6 = arith.divf %4, %5 : vector<16x1xf32>
    %7 = vector.broadcast %6 : vector<16x1xf32> to vector<16x32xf32>
    %8 = arith.subf %0, %7 : vector<16x32xf32>
    %9 = arith.mulf %8, %8 : vector<16x32xf32>
    %cst_6 = arith.constant dense<0.000000e+00> : vector<16xf32>
    %10 = vector.multi_reduction <add>, %9, %cst_6 [1] : vector<16x32xf32> to vector<16xf32>
    %11 = vector.shape_cast %10 : vector<16xf32> to vector<16x1xf32>
    %cst_7 = arith.constant 3.200000e+01 : f32
    %12 = vector.broadcast %cst_7 : f32 to vector<16x1xf32>
    %13 = arith.divf %11, %12 : vector<16x1xf32>
    %14 = vector.broadcast %6 : vector<16x1xf32> to vector<16x32xf32>
    %15 = arith.subf %0, %14 : vector<16x32xf32>
    %cst_8 = arith.constant 9.99999974E-6 : f32
    %16 = vector.broadcast %cst_8 : f32 to vector<16x1xf32>
    %17 = arith.addf %13, %16 : vector<16x1xf32>
    %18 = math.rsqrt %17 : vector<16x1xf32>
    %19 = vector.broadcast %18 : vector<16x1xf32> to vector<16x32xf32>
    %20 = arith.mulf %15, %19 : vector<16x32xf32>
    %21 = vector.broadcast %1 : vector<1x32xf32> to vector<16x32xf32>
    %22 = arith.mulf %20, %21 : vector<16x32xf32>
    %23 = vector.broadcast %2 : vector<1x32xf32> to vector<16x32xf32>
    %24 = arith.addf %22, %23 : vector<16x32xf32>
    %25 = tpu.iota {dimensions = array<i32: 1>} : vector<2x8x8xi32>
    %26 = tpu.iota {dimensions = array<i32: 2>} : vector<2x8x8xi32>
    %27 = arith.cmpi sle, %26, %25 : vector<2x8x8xi32>
    %cst_9 = arith.constant 0.000000e+00 : f32
    %28 = vector.broadcast %cst_9 : f32 to vector<16x32xf32>
    %c0_10 = arith.constant 0 : index
    %c0_11 = arith.constant 0 : index
    %c0_12 = arith.constant 0 : index
    %29 = vector.load %arg4[%c0_10, %c0_11, %c0_12] : memref<4x32x8xf32, #tpu.memory_space<vmem>>, vector<1x32x8xf32>
    %30 = vector.shape_cast %29 : vector<1x32x8xf32> to vector<32x8xf32>
    %cst_13 = arith.constant dense<0.000000e+00> : vector<16x8xf32>
    %31 = tpu.matmul %24, %30, %cst_13 {dimension_numbers = #tpu.dot_dimension_numbers<[1], [0], [0], [1], [0, 0, 1, 1], [], []>} : vector<16x32xf32>, vector<32x8xf32>, vector<16x8xf32> -> vector<16x8xf32>
    %c0_14 = arith.constant 0 : index
    %c0_15 = arith.constant 0 : index
    %c0_16 = arith.constant 0 : index
    %32 = vector.load %arg5[%c0_14, %c0_15, %c0_16] : memref<4x1x8xf32, #tpu.memory_space<vmem>>, vector<1x1x8xf32>
    %33 = vector.shape_cast %32 : vector<1x1x8xf32> to vector<1x8xf32>
    %34 = vector.broadcast %33 : vector<1x8xf32> to vector<16x8xf32>
    %35 = arith.addf %31, %34 : vector<16x8xf32>
    %c0_17 = arith.constant 0 : index
    %c0_18 = arith.constant 0 : index
    %c0_19 = arith.constant 0 : index
    %36 = vector.load %arg6[%c0_17, %c0_18, %c0_19] : memref<4x32x8xf32, #tpu.memory_space<vmem>>, vector<1x32x8xf32>
    %37 = vector.shape_cast %36 : vector<1x32x8xf32> to vector<32x8xf32>
    %cst_20 = arith.constant dense<0.000000e+00> : vector<16x8xf32>
    %38 = tpu.matmul %24, %37, %cst_20 {dimension_numbers = #tpu.dot_dimension_numbers<[1], [0], [0], [1], [0, 0, 1, 1], [], []>} : vector<16x32xf32>, vector<32x8xf32>, vector<16x8xf32> -> vector<16x8xf32>
    %c0_21 = arith.constant 0 : index
    %c0_22 = arith.constant 0 : index
    %c0_23 = arith.constant 0 : index
    %39 = vector.load %arg7[%c0_21, %c0_22, %c0_23] : memref<4x1x8xf32, #tpu.memory_space<vmem>>, vector<1x1x8xf32>
    %40 = vector.shape_cast %39 : vector<1x1x8xf32> to vector<1x8xf32>
    %41 = vector.broadcast %40 : vector<1x8xf32> to vector<16x8xf32>
    %42 = arith.addf %38, %41 : vector<16x8xf32>
    %c0_24 = arith.constant 0 : index
    %c0_25 = arith.constant 0 : index
    %c0_26 = arith.constant 0 : index
    %43 = vector.load %arg8[%c0_24, %c0_25, %c0_26] : memref<4x32x8xf32, #tpu.memory_space<vmem>>, vector<1x32x8xf32>
    %44 = vector.shape_cast %43 : vector<1x32x8xf32> to vector<32x8xf32>
    %cst_27 = arith.constant dense<0.000000e+00> : vector<16x8xf32>
    %45 = tpu.matmul %24, %44, %cst_27 {dimension_numbers = #tpu.dot_dimension_numbers<[1], [0], [0], [1], [0, 0, 1, 1], [], []>} : vector<16x32xf32>, vector<32x8xf32>, vector<16x8xf32> -> vector<16x8xf32>
    %c0_28 = arith.constant 0 : index
    %c0_29 = arith.constant 0 : index
    %c0_30 = arith.constant 0 : index
    %46 = vector.load %arg9[%c0_28, %c0_29, %c0_30] : memref<4x1x8xf32, #tpu.memory_space<vmem>>, vector<1x1x8xf32>
    %47 = vector.shape_cast %46 : vector<1x1x8xf32> to vector<1x8xf32>
    %48 = vector.broadcast %47 : vector<1x8xf32> to vector<16x8xf32>
    %49 = arith.addf %45, %48 : vector<16x8xf32>
    %50 = vector.shape_cast %35 : vector<16x8xf32> to vector<2x8x8xf32>
    %51 = vector.shape_cast %42 : vector<16x8xf32> to vector<2x8x8xf32>
    %52 = vector.shape_cast %49 : vector<16x8xf32> to vector<2x8x8xf32>
    "tpu.trace_start"() <{level = 10 : i32, message = "bqd,bkd->bqk"}> : () -> ()
    %cst_31 = arith.constant dense<0.000000e+00> : vector<2x8x8xf32>
    %53 = tpu.matmul %50, %51, %cst_31 {dimension_numbers = #tpu.dot_dimension_numbers<[2], [2], [1], [1], [0, 0, 0, 1, 1, 1], [0], [0]>} : vector<2x8x8xf32>, vector<2x8x8xf32>, vector<2x8x8xf32> -> vector<2x8x8xf32>
    "tpu.trace_stop"() : () -> ()
    %cst_32 = arith.constant 0.353553385 : f32
    %54 = vector.broadcast %cst_32 : f32 to vector<2x8x8xf32>
    %55 = arith.mulf %53, %54 : vector<2x8x8xf32>
    %cst_33 = arith.constant -1.000000e+30 : f32
    %56 = vector.broadcast %cst_33 : f32 to vector<2x8x8xf32>
    %57 = arith.select %27, %55, %56 : vector<2x8x8xi1>, vector<2x8x8xf32>
    %cst_34 = arith.constant dense<0xFF800000> : vector<2x8xf32>
    %58 = vector.multi_reduction <maximumf>, %57, %cst_34 [2] : vector<2x8x8xf32> to vector<2x8xf32>
    %59 = vector.shape_cast %58 : vector<2x8xf32> to vector<2x8x1xf32>
    %60 = vector.broadcast %59 : vector<2x8x1xf32> to vector<2x8x8xf32>
    %61 = arith.subf %57, %60 : vector<2x8x8xf32>
    %62 = math.exp %61 : vector<2x8x8xf32>
    %cst_35 = arith.constant dense<0.000000e+00> : vector<2x8xf32>
    %63 = vector.multi_reduction <add>, %62, %cst_35 [2] : vector<2x8x8xf32> to vector<2x8xf32>
    %64 = vector.shape_cast %63 : vector<2x8xf32> to vector<2x8x1xf32>
    %65 = tpu.reciprocal %64 {approx = true} : vector<2x8x1xf32> -> vector<2x8x1xf32>
    %66 = vector.broadcast %65 : vector<2x8x1xf32> to vector<2x8x8xf32>
    %67 = arith.mulf %62, %66 : vector<2x8x8xf32>
    "tpu.trace_start"() <{level = 10 : i32, message = "bqk,bkd->bqd"}> : () -> ()
    %cst_36 = arith.constant dense<0.000000e+00> : vector<2x8x8xf32>
    %68 = tpu.matmul %67, %52, %cst_36 {dimension_numbers = #tpu.dot_dimension_numbers<[2], [1], [1], [2], [0, 0, 0, 1, 1, 2], [0], [0]>} : vector<2x8x8xf32>, vector<2x8x8xf32>, vector<2x8x8xf32> -> vector<2x8x8xf32>
    "tpu.trace_stop"() : () -> ()
    %69 = vector.shape_cast %68 : vector<2x8x8xf32> to vector<16x8xf32>
    %c0_37 = arith.constant 0 : index
    %c0_38 = arith.constant 0 : index
    %c0_39 = arith.constant 0 : index
    %70 = vector.load %arg10[%c0_37, %c0_38, %c0_39] : memref<4x8x32xf32, #tpu.memory_space<vmem>>, vector<1x8x32xf32>
    %71 = vector.shape_cast %70 : vector<1x8x32xf32> to vector<8x32xf32>
    %cst_40 = arith.constant dense<0.000000e+00> : vector<16x32xf32>
    %72 = tpu.matmul %69, %71, %cst_40 {dimension_numbers = #tpu.dot_dimension_numbers<[1], [0], [0], [1], [0, 0, 1, 1], [], []>} : vector<16x8xf32>, vector<8x32xf32>, vector<16x32xf32> -> vector<16x32xf32>
    %73 = arith.addf %28, %72 : vector<16x32xf32>
    %c1 = arith.constant 1 : index
    %c0_41 = arith.constant 0 : index
    %c0_42 = arith.constant 0 : index
    %74 = vector.load %arg4[%c1, %c0_41, %c0_42] : memref<4x32x8xf32, #tpu.memory_space<vmem>>, vector<1x32x8xf32>
    %75 = vector.shape_cast %74 : vector<1x32x8xf32> to vector<32x8xf32>
    %cst_43 = arith.constant dense<0.000000e+00> : vector<16x8xf32>
    %76 = tpu.matmul %24, %75, %cst_43 {dimension_numbers = #tpu.dot_dimension_numbers<[1], [0], [0], [1], [0, 0, 1, 1], [], []>} : vector<16x32xf32>, vector<32x8xf32>, vector<16x8xf32> -> vector<16x8xf32>
    %c1_44 = arith.constant 1 : index
    %c0_45 = arith.constant 0 : index
    %c0_46 = arith.constant 0 : index
    %77 = vector.load %arg5[%c1_44, %c0_45, %c0_46] : memref<4x1x8xf32, #tpu.memory_space<vmem>>, vector<1x1x8xf32>
    %78 = vector.shape_cast %77 : vector<1x1x8xf32> to vector<1x8xf32>
    %79 = vector.broadcast %78 : vector<1x8xf32> to vector<16x8xf32>
    %80 = arith.addf %76, %79 : vector<16x8xf32>
    %c1_47 = arith.constant 1 : index
    %c0_48 = arith.constant 0 : index
    %c0_49 = arith.constant 0 : index
    %81 = vector.load %arg6[%c1_47, %c0_48, %c0_49] : memref<4x32x8xf32, #tpu.memory_space<vmem>>, vector<1x32x8xf32>
    %82 = vector.shape_cast %81 : vector<1x32x8xf32> to vector<32x8xf32>
    %cst_50 = arith.constant dense<0.000000e+00> : vector<16x8xf32>
    %83 = tpu.matmul %24, %82, %cst_50 {dimension_numbers = #tpu.dot_dimension_numbers<[1], [0], [0], [1], [0, 0, 1, 1], [], []>} : vector<16x32xf32>, vector<32x8xf32>, vector<16x8xf32> -> vector<16x8xf32>
    %c1_51 = arith.constant 1 : index
    %c0_52 = arith.constant 0 : index
    %c0_53 = arith.constant 0 : index
    %84 = vector.load %arg7[%c1_51, %c0_52, %c0_53] : memref<4x1x8xf32, #tpu.memory_space<vmem>>, vector<1x1x8xf32>
    %85 = vector.shape_cast %84 : vector<1x1x8xf32> to vector<1x8xf32>
    %86 = vector.broadcast %85 : vector<1x8xf32> to vector<16x8xf32>
    %87 = arith.addf %83, %86 : vector<16x8xf32>
    %c1_54 = arith.constant 1 : index
    %c0_55 = arith.constant 0 : index
    %c0_56 = arith.constant 0 : index
    %88 = vector.load %arg8[%c1_54, %c0_55, %c0_56] : memref<4x32x8xf32, #tpu.memory_space<vmem>>, vector<1x32x8xf32>
    %89 = vector.shape_cast %88 : vector<1x32x8xf32> to vector<32x8xf32>
    %cst_57 = arith.constant dense<0.000000e+00> : vector<16x8xf32>
    %90 = tpu.matmul %24, %89, %cst_57 {dimension_numbers = #tpu.dot_dimension_numbers<[1], [0], [0], [1], [0, 0, 1, 1], [], []>} : vector<16x32xf32>, vector<32x8xf32>, vector<16x8xf32> -> vector<16x8xf32>
    %c1_58 = arith.constant 1 : index
    %c0_59 = arith.constant 0 : index
    %c0_60 = arith.constant 0 : index
    %91 = vector.load %arg9[%c1_58, %c0_59, %c0_60] : memref<4x1x8xf32, #tpu.memory_space<vmem>>, vector<1x1x8xf32>
    %92 = vector.shape_cast %91 : vector<1x1x8xf32> to vector<1x8xf32>
    %93 = vector.broadcast %92 : vector<1x8xf32> to vector<16x8xf32>
    %94 = arith.addf %90, %93 : vector<16x8xf32>
    %95 = vector.shape_cast %80 : vector<16x8xf32> to vector<2x8x8xf32>
    %96 = vector.shape_cast %87 : vector<16x8xf32> to vector<2x8x8xf32>
    %97 = vector.shape_cast %94 : vector<16x8xf32> to vector<2x8x8xf32>
    "tpu.trace_start"() <{level = 10 : i32, message = "bqd,bkd->bqk"}> : () -> ()
    %cst_61 = arith.constant dense<0.000000e+00> : vector<2x8x8xf32>
    %98 = tpu.matmul %95, %96, %cst_61 {dimension_numbers = #tpu.dot_dimension_numbers<[2], [2], [1], [1], [0, 0, 0, 1, 1, 1], [0], [0]>} : vector<2x8x8xf32>, vector<2x8x8xf32>, vector<2x8x8xf32> -> vector<2x8x8xf32>
    "tpu.trace_stop"() : () -> ()
    %cst_62 = arith.constant 0.353553385 : f32
    %99 = vector.broadcast %cst_62 : f32 to vector<2x8x8xf32>
    %100 = arith.mulf %98, %99 : vector<2x8x8xf32>
    %cst_63 = arith.constant -1.000000e+30 : f32
    %101 = vector.broadcast %cst_63 : f32 to vector<2x8x8xf32>
    %102 = arith.select %27, %100, %101 : vector<2x8x8xi1>, vector<2x8x8xf32>
    %cst_64 = arith.constant dense<0xFF800000> : vector<2x8xf32>
    %103 = vector.multi_reduction <maximumf>, %102, %cst_64 [2] : vector<2x8x8xf32> to vector<2x8xf32>
    %104 = vector.shape_cast %103 : vector<2x8xf32> to vector<2x8x1xf32>
    %105 = vector.broadcast %104 : vector<2x8x1xf32> to vector<2x8x8xf32>
    %106 = arith.subf %102, %105 : vector<2x8x8xf32>
    %107 = math.exp %106 : vector<2x8x8xf32>
    %cst_65 = arith.constant dense<0.000000e+00> : vector<2x8xf32>
    %108 = vector.multi_reduction <add>, %107, %cst_65 [2] : vector<2x8x8xf32> to vector<2x8xf32>
    %109 = vector.shape_cast %108 : vector<2x8xf32> to vector<2x8x1xf32>
    %110 = tpu.reciprocal %109 {approx = true} : vector<2x8x1xf32> -> vector<2x8x1xf32>
    %111 = vector.broadcast %110 : vector<2x8x1xf32> to vector<2x8x8xf32>
    %112 = arith.mulf %107, %111 : vector<2x8x8xf32>
    "tpu.trace_start"() <{level = 10 : i32, message = "bqk,bkd->bqd"}> : () -> ()
    %cst_66 = arith.constant dense<0.000000e+00> : vector<2x8x8xf32>
    %113 = tpu.matmul %112, %97, %cst_66 {dimension_numbers = #tpu.dot_dimension_numbers<[2], [1], [1], [2], [0, 0, 0, 1, 1, 2], [0], [0]>} : vector<2x8x8xf32>, vector<2x8x8xf32>, vector<2x8x8xf32> -> vector<2x8x8xf32>
    "tpu.trace_stop"() : () -> ()
    %114 = vector.shape_cast %113 : vector<2x8x8xf32> to vector<16x8xf32>
    %c1_67 = arith.constant 1 : index
    %c0_68 = arith.constant 0 : index
    %c0_69 = arith.constant 0 : index
    %115 = vector.load %arg10[%c1_67, %c0_68, %c0_69] : memref<4x8x32xf32, #tpu.memory_space<vmem>>, vector<1x8x32xf32>
    %116 = vector.shape_cast %115 : vector<1x8x32xf32> to vector<8x32xf32>
    %cst_70 = arith.constant dense<0.000000e+00> : vector<16x32xf32>
    %117 = tpu.matmul %114, %116, %cst_70 {dimension_numbers = #tpu.dot_dimension_numbers<[1], [0], [0], [1], [0, 0, 1, 1], [], []>} : vector<16x8xf32>, vector<8x32xf32>, vector<16x32xf32> -> vector<16x32xf32>
    %118 = arith.addf %73, %117 : vector<16x32xf32>
    %c2 = arith.constant 2 : index
    %c0_71 = arith.constant 0 : index
    %c0_72 = arith.constant 0 : index
    %119 = vector.load %arg4[%c2, %c0_71, %c0_72] : memref<4x32x8xf32, #tpu.memory_space<vmem>>, vector<1x32x8xf32>
    %120 = vector.shape_cast %119 : vector<1x32x8xf32> to vector<32x8xf32>
    %cst_73 = arith.constant dense<0.000000e+00> : vector<16x8xf32>
    %121 = tpu.matmul %24, %120, %cst_73 {dimension_numbers = #tpu.dot_dimension_numbers<[1], [0], [0], [1], [0, 0, 1, 1], [], []>} : vector<16x32xf32>, vector<32x8xf32>, vector<16x8xf32> -> vector<16x8xf32>
    %c2_74 = arith.constant 2 : index
    %c0_75 = arith.constant 0 : index
    %c0_76 = arith.constant 0 : index
    %122 = vector.load %arg5[%c2_74, %c0_75, %c0_76] : memref<4x1x8xf32, #tpu.memory_space<vmem>>, vector<1x1x8xf32>
    %123 = vector.shape_cast %122 : vector<1x1x8xf32> to vector<1x8xf32>
    %124 = vector.broadcast %123 : vector<1x8xf32> to vector<16x8xf32>
    %125 = arith.addf %121, %124 : vector<16x8xf32>
    %c2_77 = arith.constant 2 : index
    %c0_78 = arith.constant 0 : index
    %c0_79 = arith.constant 0 : index
    %126 = vector.load %arg6[%c2_77, %c0_78, %c0_79] : memref<4x32x8xf32, #tpu.memory_space<vmem>>, vector<1x32x8xf32>
    %127 = vector.shape_cast %126 : vector<1x32x8xf32> to vector<32x8xf32>
    %cst_80 = arith.constant dense<0.000000e+00> : vector<16x8xf32>
    %128 = tpu.matmul %24, %127, %cst_80 {dimension_numbers = #tpu.dot_dimension_numbers<[1], [0], [0], [1], [0, 0, 1, 1], [], []>} : vector<16x32xf32>, vector<32x8xf32>, vector<16x8xf32> -> vector<16x8xf32>
    %c2_81 = arith.constant 2 : index
    %c0_82 = arith.constant 0 : index
    %c0_83 = arith.constant 0 : index
    %129 = vector.load %arg7[%c2_81, %c0_82, %c0_83] : memref<4x1x8xf32, #tpu.memory_space<vmem>>, vector<1x1x8xf32>
    %130 = vector.shape_cast %129 : vector<1x1x8xf32> to vector<1x8xf32>
    %131 = vector.broadcast %130 : vector<1x8xf32> to vector<16x8xf32>
    %132 = arith.addf %128, %131 : vector<16x8xf32>
    %c2_84 = arith.constant 2 : index
    %c0_85 = arith.constant 0 : index
    %c0_86 = arith.constant 0 : index
    %133 = vector.load %arg8[%c2_84, %c0_85, %c0_86] : memref<4x32x8xf32, #tpu.memory_space<vmem>>, vector<1x32x8xf32>
    %134 = vector.shape_cast %133 : vector<1x32x8xf32> to vector<32x8xf32>
    %cst_87 = arith.constant dense<0.000000e+00> : vector<16x8xf32>
    %135 = tpu.matmul %24, %134, %cst_87 {dimension_numbers = #tpu.dot_dimension_numbers<[1], [0], [0], [1], [0, 0, 1, 1], [], []>} : vector<16x32xf32>, vector<32x8xf32>, vector<16x8xf32> -> vector<16x8xf32>
    %c2_88 = arith.constant 2 : index
    %c0_89 = arith.constant 0 : index
    %c0_90 = arith.constant 0 : index
    %136 = vector.load %arg9[%c2_88, %c0_89, %c0_90] : memref<4x1x8xf32, #tpu.memory_space<vmem>>, vector<1x1x8xf32>
    %137 = vector.shape_cast %136 : vector<1x1x8xf32> to vector<1x8xf32>
    %138 = vector.broadcast %137 : vector<1x8xf32> to vector<16x8xf32>
    %139 = arith.addf %135, %138 : vector<16x8xf32>
    %140 = vector.shape_cast %125 : vector<16x8xf32> to vector<2x8x8xf32>
    %141 = vector.shape_cast %132 : vector<16x8xf32> to vector<2x8x8xf32>
    %142 = vector.shape_cast %139 : vector<16x8xf32> to vector<2x8x8xf32>
    "tpu.trace_start"() <{level = 10 : i32, message = "bqd,bkd->bqk"}> : () -> ()
    %cst_91 = arith.constant dense<0.000000e+00> : vector<2x8x8xf32>
    %143 = tpu.matmul %140, %141, %cst_91 {dimension_numbers = #tpu.dot_dimension_numbers<[2], [2], [1], [1], [0, 0, 0, 1, 1, 1], [0], [0]>} : vector<2x8x8xf32>, vector<2x8x8xf32>, vector<2x8x8xf32> -> vector<2x8x8xf32>
    "tpu.trace_stop"() : () -> ()
    %cst_92 = arith.constant 0.353553385 : f32
    %144 = vector.broadcast %cst_92 : f32 to vector<2x8x8xf32>
    %145 = arith.mulf %143, %144 : vector<2x8x8xf32>
    %cst_93 = arith.constant -1.000000e+30 : f32
    %146 = vector.broadcast %cst_93 : f32 to vector<2x8x8xf32>
    %147 = arith.select %27, %145, %146 : vector<2x8x8xi1>, vector<2x8x8xf32>
    %cst_94 = arith.constant dense<0xFF800000> : vector<2x8xf32>
    %148 = vector.multi_reduction <maximumf>, %147, %cst_94 [2] : vector<2x8x8xf32> to vector<2x8xf32>
    %149 = vector.shape_cast %148 : vector<2x8xf32> to vector<2x8x1xf32>
    %150 = vector.broadcast %149 : vector<2x8x1xf32> to vector<2x8x8xf32>
    %151 = arith.subf %147, %150 : vector<2x8x8xf32>
    %152 = math.exp %151 : vector<2x8x8xf32>
    %cst_95 = arith.constant dense<0.000000e+00> : vector<2x8xf32>
    %153 = vector.multi_reduction <add>, %152, %cst_95 [2] : vector<2x8x8xf32> to vector<2x8xf32>
    %154 = vector.shape_cast %153 : vector<2x8xf32> to vector<2x8x1xf32>
    %155 = tpu.reciprocal %154 {approx = true} : vector<2x8x1xf32> -> vector<2x8x1xf32>
    %156 = vector.broadcast %155 : vector<2x8x1xf32> to vector<2x8x8xf32>
    %157 = arith.mulf %152, %156 : vector<2x8x8xf32>
    "tpu.trace_start"() <{level = 10 : i32, message = "bqk,bkd->bqd"}> : () -> ()
    %cst_96 = arith.constant dense<0.000000e+00> : vector<2x8x8xf32>
    %158 = tpu.matmul %157, %142, %cst_96 {dimension_numbers = #tpu.dot_dimension_numbers<[2], [1], [1], [2], [0, 0, 0, 1, 1, 2], [0], [0]>} : vector<2x8x8xf32>, vector<2x8x8xf32>, vector<2x8x8xf32> -> vector<2x8x8xf32>
    "tpu.trace_stop"() : () -> ()
    %159 = vector.shape_cast %158 : vector<2x8x8xf32> to vector<16x8xf32>
    %c2_97 = arith.constant 2 : index
    %c0_98 = arith.constant 0 : index
    %c0_99 = arith.constant 0 : index
    %160 = vector.load %arg10[%c2_97, %c0_98, %c0_99] : memref<4x8x32xf32, #tpu.memory_space<vmem>>, vector<1x8x32xf32>
    %161 = vector.shape_cast %160 : vector<1x8x32xf32> to vector<8x32xf32>
    %cst_100 = arith.constant dense<0.000000e+00> : vector<16x32xf32>
    %162 = tpu.matmul %159, %161, %cst_100 {dimension_numbers = #tpu.dot_dimension_numbers<[1], [0], [0], [1], [0, 0, 1, 1], [], []>} : vector<16x8xf32>, vector<8x32xf32>, vector<16x32xf32> -> vector<16x32xf32>
    %163 = arith.addf %118, %162 : vector<16x32xf32>
    %c3 = arith.constant 3 : index
    %c0_101 = arith.constant 0 : index
    %c0_102 = arith.constant 0 : index
    %164 = vector.load %arg4[%c3, %c0_101, %c0_102] : memref<4x32x8xf32, #tpu.memory_space<vmem>>, vector<1x32x8xf32>
    %165 = vector.shape_cast %164 : vector<1x32x8xf32> to vector<32x8xf32>
    %cst_103 = arith.constant dense<0.000000e+00> : vector<16x8xf32>
    %166 = tpu.matmul %24, %165, %cst_103 {dimension_numbers = #tpu.dot_dimension_numbers<[1], [0], [0], [1], [0, 0, 1, 1], [], []>} : vector<16x32xf32>, vector<32x8xf32>, vector<16x8xf32> -> vector<16x8xf32>
    %c3_104 = arith.constant 3 : index
    %c0_105 = arith.constant 0 : index
    %c0_106 = arith.constant 0 : index
    %167 = vector.load %arg5[%c3_104, %c0_105, %c0_106] : memref<4x1x8xf32, #tpu.memory_space<vmem>>, vector<1x1x8xf32>
    %168 = vector.shape_cast %167 : vector<1x1x8xf32> to vector<1x8xf32>
    %169 = vector.broadcast %168 : vector<1x8xf32> to vector<16x8xf32>
    %170 = arith.addf %166, %169 : vector<16x8xf32>
    %c3_107 = arith.constant 3 : index
    %c0_108 = arith.constant 0 : index
    %c0_109 = arith.constant 0 : index
    %171 = vector.load %arg6[%c3_107, %c0_108, %c0_109] : memref<4x32x8xf32, #tpu.memory_space<vmem>>, vector<1x32x8xf32>
    %172 = vector.shape_cast %171 : vector<1x32x8xf32> to vector<32x8xf32>
    %cst_110 = arith.constant dense<0.000000e+00> : vector<16x8xf32>
    %173 = tpu.matmul %24, %172, %cst_110 {dimension_numbers = #tpu.dot_dimension_numbers<[1], [0], [0], [1], [0, 0, 1, 1], [], []>} : vector<16x32xf32>, vector<32x8xf32>, vector<16x8xf32> -> vector<16x8xf32>
    %c3_111 = arith.constant 3 : index
    %c0_112 = arith.constant 0 : index
    %c0_113 = arith.constant 0 : index
    %174 = vector.load %arg7[%c3_111, %c0_112, %c0_113] : memref<4x1x8xf32, #tpu.memory_space<vmem>>, vector<1x1x8xf32>
    %175 = vector.shape_cast %174 : vector<1x1x8xf32> to vector<1x8xf32>
    %176 = vector.broadcast %175 : vector<1x8xf32> to vector<16x8xf32>
    %177 = arith.addf %173, %176 : vector<16x8xf32>
    %c3_114 = arith.constant 3 : index
    %c0_115 = arith.constant 0 : index
    %c0_116 = arith.constant 0 : index
    %178 = vector.load %arg8[%c3_114, %c0_115, %c0_116] : memref<4x32x8xf32, #tpu.memory_space<vmem>>, vector<1x32x8xf32>
    %179 = vector.shape_cast %178 : vector<1x32x8xf32> to vector<32x8xf32>
    %cst_117 = arith.constant dense<0.000000e+00> : vector<16x8xf32>
    %180 = tpu.matmul %24, %179, %cst_117 {dimension_numbers = #tpu.dot_dimension_numbers<[1], [0], [0], [1], [0, 0, 1, 1], [], []>} : vector<16x32xf32>, vector<32x8xf32>, vector<16x8xf32> -> vector<16x8xf32>
    %c3_118 = arith.constant 3 : index
    %c0_119 = arith.constant 0 : index
    %c0_120 = arith.constant 0 : index
    %181 = vector.load %arg9[%c3_118, %c0_119, %c0_120] : memref<4x1x8xf32, #tpu.memory_space<vmem>>, vector<1x1x8xf32>
    %182 = vector.shape_cast %181 : vector<1x1x8xf32> to vector<1x8xf32>
    %183 = vector.broadcast %182 : vector<1x8xf32> to vector<16x8xf32>
    %184 = arith.addf %180, %183 : vector<16x8xf32>
    %185 = vector.shape_cast %170 : vector<16x8xf32> to vector<2x8x8xf32>
    %186 = vector.shape_cast %177 : vector<16x8xf32> to vector<2x8x8xf32>
    %187 = vector.shape_cast %184 : vector<16x8xf32> to vector<2x8x8xf32>
    "tpu.trace_start"() <{level = 10 : i32, message = "bqd,bkd->bqk"}> : () -> ()
    %cst_121 = arith.constant dense<0.000000e+00> : vector<2x8x8xf32>
    %188 = tpu.matmul %185, %186, %cst_121 {dimension_numbers = #tpu.dot_dimension_numbers<[2], [2], [1], [1], [0, 0, 0, 1, 1, 1], [0], [0]>} : vector<2x8x8xf32>, vector<2x8x8xf32>, vector<2x8x8xf32> -> vector<2x8x8xf32>
    "tpu.trace_stop"() : () -> ()
    %cst_122 = arith.constant 0.353553385 : f32
    %189 = vector.broadcast %cst_122 : f32 to vector<2x8x8xf32>
    %190 = arith.mulf %188, %189 : vector<2x8x8xf32>
    %cst_123 = arith.constant -1.000000e+30 : f32
    %191 = vector.broadcast %cst_123 : f32 to vector<2x8x8xf32>
    %192 = arith.select %27, %190, %191 : vector<2x8x8xi1>, vector<2x8x8xf32>
    %cst_124 = arith.constant dense<0xFF800000> : vector<2x8xf32>
    %193 = vector.multi_reduction <maximumf>, %192, %cst_124 [2] : vector<2x8x8xf32> to vector<2x8xf32>
    %194 = vector.shape_cast %193 : vector<2x8xf32> to vector<2x8x1xf32>
    %195 = vector.broadcast %194 : vector<2x8x1xf32> to vector<2x8x8xf32>
    %196 = arith.subf %192, %195 : vector<2x8x8xf32>
    %197 = math.exp %196 : vector<2x8x8xf32>
    %cst_125 = arith.constant dense<0.000000e+00> : vector<2x8xf32>
    %198 = vector.multi_reduction <add>, %197, %cst_125 [2] : vector<2x8x8xf32> to vector<2x8xf32>
    %199 = vector.shape_cast %198 : vector<2x8xf32> to vector<2x8x1xf32>
    %200 = tpu.reciprocal %199 {approx = true} : vector<2x8x1xf32> -> vector<2x8x1xf32>
    %201 = vector.broadcast %200 : vector<2x8x1xf32> to vector<2x8x8xf32>
    %202 = arith.mulf %197, %201 : vector<2x8x8xf32>
    "tpu.trace_start"() <{level = 10 : i32, message = "bqk,bkd->bqd"}> : () -> ()
    %cst_126 = arith.constant dense<0.000000e+00> : vector<2x8x8xf32>
    %203 = tpu.matmul %202, %187, %cst_126 {dimension_numbers = #tpu.dot_dimension_numbers<[2], [1], [1], [2], [0, 0, 0, 1, 1, 2], [0], [0]>} : vector<2x8x8xf32>, vector<2x8x8xf32>, vector<2x8x8xf32> -> vector<2x8x8xf32>
    "tpu.trace_stop"() : () -> ()
    %204 = vector.shape_cast %203 : vector<2x8x8xf32> to vector<16x8xf32>
    %c3_127 = arith.constant 3 : index
    %c0_128 = arith.constant 0 : index
    %c0_129 = arith.constant 0 : index
    %205 = vector.load %arg10[%c3_127, %c0_128, %c0_129] : memref<4x8x32xf32, #tpu.memory_space<vmem>>, vector<1x8x32xf32>
    %206 = vector.shape_cast %205 : vector<1x8x32xf32> to vector<8x32xf32>
    %cst_130 = arith.constant dense<0.000000e+00> : vector<16x32xf32>
    %207 = tpu.matmul %204, %206, %cst_130 {dimension_numbers = #tpu.dot_dimension_numbers<[1], [0], [0], [1], [0, 0, 1, 1], [], []>} : vector<16x8xf32>, vector<8x32xf32>, vector<16x32xf32> -> vector<16x32xf32>
    %208 = arith.addf %163, %207 : vector<16x32xf32>
    %209 = arith.addf %0, %208 : vector<16x32xf32>
    %c0_131 = arith.constant 0 : index
    %c0_132 = arith.constant 0 : index
    %210 = vector.load %arg11[%c0_131, %c0_132] : memref<1x32xf32, #tpu.memory_space<vmem>>, vector<1x32xf32>
    %211 = vector.broadcast %210 : vector<1x32xf32> to vector<16x32xf32>
    %212 = arith.addf %209, %211 : vector<16x32xf32>
    %c0_133 = arith.constant 0 : index
    %c0_134 = arith.constant 0 : index
    %213 = vector.load %arg12[%c0_133, %c0_134] : memref<1x32xf32, #tpu.memory_space<vmem>>, vector<1x32xf32>
    %c0_135 = arith.constant 0 : index
    %c0_136 = arith.constant 0 : index
    %214 = vector.load %arg13[%c0_135, %c0_136] : memref<1x32xf32, #tpu.memory_space<vmem>>, vector<1x32xf32>
    %cst_137 = arith.constant dense<0.000000e+00> : vector<16xf32>
    %215 = vector.multi_reduction <add>, %212, %cst_137 [1] : vector<16x32xf32> to vector<16xf32>
    %216 = vector.shape_cast %215 : vector<16xf32> to vector<16x1xf32>
    %cst_138 = arith.constant 3.200000e+01 : f32
    %217 = vector.broadcast %cst_138 : f32 to vector<16x1xf32>
    %218 = arith.divf %216, %217 : vector<16x1xf32>
    %219 = vector.broadcast %218 : vector<16x1xf32> to vector<16x32xf32>
    %220 = arith.subf %212, %219 : vector<16x32xf32>
    %221 = arith.mulf %220, %220 : vector<16x32xf32>
    %cst_139 = arith.constant dense<0.000000e+00> : vector<16xf32>
    %222 = vector.multi_reduction <add>, %221, %cst_139 [1] : vector<16x32xf32> to vector<16xf32>
    %223 = vector.shape_cast %222 : vector<16xf32> to vector<16x1xf32>
    %cst_140 = arith.constant 3.200000e+01 : f32
    %224 = vector.broadcast %cst_140 : f32 to vector<16x1xf32>
    %225 = arith.divf %223, %224 : vector<16x1xf32>
    %226 = vector.broadcast %218 : vector<16x1xf32> to vector<16x32xf32>
    %227 = arith.subf %212, %226 : vector<16x32xf32>
    %cst_141 = arith.constant 9.99999974E-6 : f32
    %228 = vector.broadcast %cst_141 : f32 to vector<16x1xf32>
    %229 = arith.addf %225, %228 : vector<16x1xf32>
    %230 = math.rsqrt %229 : vector<16x1xf32>
    %231 = vector.broadcast %230 : vector<16x1xf32> to vector<16x32xf32>
    %232 = arith.mulf %227, %231 : vector<16x32xf32>
    %233 = vector.broadcast %213 : vector<1x32xf32> to vector<16x32xf32>
    %234 = arith.mulf %232, %233 : vector<16x32xf32>
    %235 = vector.broadcast %214 : vector<1x32xf32> to vector<16x32xf32>
    %236 = arith.addf %234, %235 : vector<16x32xf32>
    %c0_142 = arith.constant 0 : index
    %c0_143 = arith.constant 0 : index
    %237 = vector.load %arg14[%c0_142, %c0_143] : memref<32x128xf32, #tpu.memory_space<vmem>>, vector<32x128xf32>
    %cst_144 = arith.constant dense<0.000000e+00> : vector<16x128xf32>
    %238 = tpu.matmul %236, %237, %cst_144 {dimension_numbers = #tpu.dot_dimension_numbers<[1], [0], [0], [1], [0, 0, 1, 1], [], []>} : vector<16x32xf32>, vector<32x128xf32>, vector<16x128xf32> -> vector<16x128xf32>
    %c0_145 = arith.constant 0 : index
    %c0_146 = arith.constant 0 : index
    %239 = vector.load %arg15[%c0_145, %c0_146] : memref<1x128xf32, #tpu.memory_space<vmem>>, vector<1x128xf32>
    %240 = vector.broadcast %239 : vector<1x128xf32> to vector<16x128xf32>
    %241 = arith.addf %238, %240 : vector<16x128xf32>
    %cst_147 = arith.constant 5.000000e-01 : f32
    %242 = vector.broadcast %cst_147 : f32 to vector<16x128xf32>
    %243 = arith.mulf %242, %241 : vector<16x128xf32>
    %cst_148 = arith.constant 4.471500e-02 : f32
    %244 = vector.broadcast %cst_148 : f32 to vector<16x128xf32>
    %245 = arith.mulf %244, %241 : vector<16x128xf32>
    %246 = arith.mulf %245, %241 : vector<16x128xf32>
    %247 = arith.mulf %246, %241 : vector<16x128xf32>
    %248 = arith.addf %241, %247 : vector<16x128xf32>
    %cst_149 = arith.constant 0.797884583 : f32
    %249 = vector.broadcast %cst_149 : f32 to vector<16x128xf32>
    %250 = arith.mulf %249, %248 : vector<16x128xf32>
    %251 = math.tanh %250 : vector<16x128xf32>
    %cst_150 = arith.constant 1.000000e+00 : f32
    %252 = vector.broadcast %cst_150 : f32 to vector<16x128xf32>
    %253 = arith.addf %252, %251 : vector<16x128xf32>
    %254 = arith.mulf %243, %253 : vector<16x128xf32>
    %c0_151 = arith.constant 0 : index
    %c0_152 = arith.constant 0 : index
    %255 = vector.load %arg16[%c0_151, %c0_152] : memref<128x32xf32, #tpu.memory_space<vmem>>, vector<128x32xf32>
    %cst_153 = arith.constant dense<0.000000e+00> : vector<16x32xf32>
    %256 = tpu.matmul %254, %255, %cst_153 {dimension_numbers = #tpu.dot_dimension_numbers<[1], [0], [0], [1], [0, 0, 1, 1], [], []>} : vector<16x128xf32>, vector<128x32xf32>, vector<16x32xf32> -> vector<16x32xf32>
    %c0_154 = arith.constant 0 : index
    %c0_155 = arith.constant 0 : index
    %257 = vector.load %arg17[%c0_154, %c0_155] : memref<1x32xf32, #tpu.memory_space<vmem>>, vector<1x32xf32>
    %258 = vector.broadcast %257 : vector<1x32xf32> to vector<16x32xf32>
    %259 = arith.addf %256, %258 : vector<16x32xf32>
    %260 = arith.addf %212, %259 : vector<16x32xf32>
    %c0_156 = arith.constant 0 : index
    %c0_157 = arith.constant 0 : index
    %261 = vector.load %arg18[%c0_156, %c0_157] : memref<16x32xf32, #tpu.memory_space<vmem>>, vector<16x32xf32>
    tpu.vector_store %arg18[%c0_156, %c0_157], %260 {strides = array<i32>} : memref<16x32xf32, #tpu.memory_space<vmem>>, vector<16x32xf32>,
    return
  }
  func.func @transform_0(%arg0: i32) -> (i32, i32) {
    %c0_i32 = arith.constant 0 : i32
    %c0_i32_0 = arith.constant 0 : i32
    %c0_i32_1 = arith.constant 0 : i32
    return %c0_i32, %c0_i32_0 : i32, i32
  }
  func.func @transform_1(%arg0: i32) -> (i32, i32) {
    %c0_i32 = arith.constant 0 : i32
    %c0_i32_0 = arith.constant 0 : i32
    %c0_i32_1 = arith.constant 0 : i32
    return %c0_i32, %c0_i32_0 : i32, i32
  }
  func.func @transform_2(%arg0: i32) -> (i32, i32) {
    %c0_i32 = arith.constant 0 : i32
    %c0_i32_0 = arith.constant 0 : i32
    %c0_i32_1 = arith.constant 0 : i32
    return %c0_i32, %c0_i32_0 : i32, i32
  }
  func.func @transform_3(%arg0: i32) -> (i32, i32, i32) {
    %c0_i32 = arith.constant 0 : i32
    %c0_i32_0 = arith.constant 0 : i32
    %c0_i32_1 = arith.constant 0 : i32
    %c0_i32_2 = arith.constant 0 : i32
    return %c0_i32, %c0_i32_0, %c0_i32_1 : i32, i32, i32
  }
  func.func @transform_4(%arg0: i32) -> (i32, i32, i32) {
    %c0_i32 = arith.constant 0 : i32
    %c0_i32_0 = arith.constant 0 : i32
    %c0_i32_1 = arith.constant 0 : i32
    %c0_i32_2 = arith.constant 0 : i32
    return %c0_i32, %c0_i32_0, %c0_i32_1 : i32, i32, i32
  }
  func.func @transform_5(%arg0: i32) -> (i32, i32, i32) {
    %c0_i32 = arith.constant 0 : i32
    %c0_i32_0 = arith.constant 0 : i32
    %c0_i32_1 = arith.constant 0 : i32
    %c0_i32_2 = arith.constant 0 : i32
    return %c0_i32, %c0_i32_0, %c0_i32_1 : i32, i32, i32
  }
  func.func @transform_6(%arg0: i32) -> (i32, i32, i32) {
    %c0_i32 = arith.constant 0 : i32
    %c0_i32_0 = arith.constant 0 : i32
    %c0_i32_1 = arith.constant 0 : i32
    %c0_i32_2 = arith.constant 0 : i32
    return %c0_i32, %c0_i32_0, %c0_i32_1 : i32, i32, i32
  }
  func.func @transform_7(%arg0: i32) -> (i32, i32, i32) {
    %c0_i32 = arith.constant 0 : i32
    %c0_i32_0 = arith.constant 0 : i32
    %c0_i32_1 = arith.constant 0 : i32
    %c0_i32_2 = arith.constant 0 : i32
    return %c0_i32, %c0_i32_0, %c0_i32_1 : i32, i32, i32
  }
  func.func @transform_8(%arg0: i32) -> (i32, i32, i32) {
    %c0_i32 = arith.constant 0 : i32
    %c0_i32_0 = arith.constant 0 : i32
    %c0_i32_1 = arith.constant 0 : i32
    %c0_i32_2 = arith.constant 0 : i32
    return %c0_i32, %c0_i32_0, %c0_i32_1 : i32, i32, i32
  }
  func.func @transform_9(%arg0: i32) -> (i32, i32, i32) {
    %c0_i32 = arith.constant 0 : i32
    %c0_i32_0 = arith.constant 0 : i32
    %c0_i32_1 = arith.constant 0 : i32
    %c0_i32_2 = arith.constant 0 : i32
    return %c0_i32, %c0_i32_0, %c0_i32_1 : i32, i32, i32
  }
  func.func @transform_10(%arg0: i32) -> (i32, i32) {
    %c0_i32 = arith.constant 0 : i32
    %c0_i32_0 = arith.constant 0 : i32
    %c0_i32_1 = arith.constant 0 : i32
    return %c0_i32, %c0_i32_0 : i32, i32
  }
  func.func @transform_11(%arg0: i32) -> (i32, i32) {
    %c0_i32 = arith.constant 0 : i32
    %c0_i32_0 = arith.constant 0 : i32
    %c0_i32_1 = arith.constant 0 : i32
    return %c0_i32, %c0_i32_0 : i32, i32
  }
  func.func @transform_12(%arg0: i32) -> (i32, i32) {
    %c0_i32 = arith.constant 0 : i32
    %c0_i32_0 = arith.constant 0 : i32
    %c0_i32_1 = arith.constant 0 : i32
    return %c0_i32, %c0_i32_0 : i32, i32
  }
  func.func @transform_13(%arg0: i32) -> (i32, i32) {
    %c0_i32 = arith.constant 0 : i32
    %c0_i32_0 = arith.constant 0 : i32
    %c0_i32_1 = arith.constant 0 : i32
    return %c0_i32, %c0_i32_0 : i32, i32
  }
  func.func @transform_14(%arg0: i32) -> (i32, i32) {
    %c0_i32 = arith.constant 0 : i32
    %c0_i32_0 = arith.constant 0 : i32
    %c0_i32_1 = arith.constant 0 : i32
    return %c0_i32, %c0_i32_0 : i32, i32
  }
  func.func @transform_15(%arg0: i32) -> (i32, i32) {
    %c0_i32 = arith.constant 0 : i32
    %c0_i32_0 = arith.constant 0 : i32
    %c0_i32_1 = arith.constant 0 : i32
    return %c0_i32, %c0_i32_0 : i32, i32
  }
  func.func @transform_16(%arg0: i32) -> (i32, i32) {
    %c0_i32 = arith.constant 0 : i32
    %c0_i32_0 = arith.constant 0 : i32
    %c0_i32_1 = arith.constant 0 : i32
    return %c0_i32, %c0_i32_0 : i32, i32
  }
  func.func @transform_17(%arg0: i32) -> (i32, i32) {
    %c0_i32 = arith.constant 0 : i32
    %c0_i32_0 = arith.constant 0 : i32
    %c0_i32_1 = arith.constant 0 : i32
    return %c0_i32, %c0_i32_0 : i32, i32
  }
}

</mosaic_0001>

<bundles_post_ra>
// kernel: tpu_custom_call.1
= control target key start
LH: loop header
LB: loop body
LE: loop exit
PB: predicated region body
PF: predicated region fallthrough
CT: control target
= control target key end

     0   :  { %s4431_s0 = inlined_call_operand.vmem [shape: f32[16,32], index: 0, kind: input, shape index: {}]   ;;  %s4432_s1 = inlined_call_operand.vmem [shape: f32[1,32], index: 1, kind: input, shape index: {}]   ;;  %s4433_s2 = inlined_call_operand.vmem [shape: f32[1,32], index: 2, kind: input, shape index: {}]   ;;  %s4434_s3 = inlined_call_operand.vmem [shape: f32[4,32,8], index: 3, kind: input, shape index: {}]   ;;  %s4435_s4 = inlined_call_operand.vmem [shape: f32[4,1,8], index: 4, kind: input, shape index: {}]   ;;  %s4436_s5 = inlined_call_operand.vmem [shape: f32[4,32,8], index: 5, kind: input, shape index: {}]   ;;  %s4437_s6 = inlined_call_operand.vmem [shape: f32[4,1,8], index: 6, kind: input, shape index: {}]   ;;  %s4438_s7 = inlined_call_operand.vmem [shape: f32[4,32,8], index: 7, kind: input, shape index: {}]   ;;  %s4439_s8 = inlined_call_operand.vmem [shape: f32[4,1,8], index: 8, kind: input, shape index: {}]   ;;  %s4440_s9 = inlined_call_operand.vmem [shape: f32[4,8,32], index: 9, kind: input, shape index: {}]   ;;  %s4441_s10 = inlined_call_operand.vmem [shape: f32[1,32], index: 10, kind: input, shape index: {}]   ;;  %s4442_s11 = inlined_call_operand.vmem [shape: f32[1,32], index: 11, kind: input, shape index: {}]   ;;  %s4443_s12 = inlined_call_operand.vmem [shape: f32[1,32], index: 12, kind: input, shape index: {}]   ;;  %s4444_s13 = inlined_call_operand.vmem [shape: f32[32,128], index: 13, kind: input, shape index: {}]   ;;  %s4445_s14 = inlined_call_operand.vmem [shape: f32[1,128], index: 14, kind: input, shape index: {}]   ;;  %s4446_s15 = inlined_call_operand.vmem [shape: f32[128,32], index: 15, kind: input, shape index: {}]   ;;  %s4447_s16 = inlined_call_operand.vmem [shape: f32[1,32], index: 16, kind: input, shape index: {}]   ;;  %s4448_s17 = inlined_call_operand.hbm [shape: f32[16,32], index: 17, kind: output, shape index: {}]  }
   0x1   :  { %4450 = sst [smem:[#allocation5_spill]] %s4431_s0 }
   0x2   :  { %4451 = sst [smem:[#allocation6_spill]] %s4432_s1 }
   0x3   :  { %s4452_s26 = sld [smem:[#allocation5_spill]]  ;;  %vm61_vm0 = vcmask 261120  }
   0x9   :  { %v3937_v0 = vld [vmem:[%s4452_s26] sm:$0xff]  ;;  %v3942_v1 = vld [vmem:[%s4452_s26 + $0x8] sm:$0xff] }
   0xa   :  { %22 = vsyncpa [#allocation3], 0  ;;  %v62_v2 = vsel %vm61_vm0, %v3937_v0, 0.0  ;;  %v65_v3 = vsel %vm61_vm0, %v3942_v1, 0.0  ;;  %v110_v14 = vld [vmem:[%s4434_s3] sm:$0xff]  ;;  %v111_v15 = vld [vmem:[%s4434_s3 + $0x8] sm:$0xff] }
   0xb   :  { %63 = vadd.xlane.f32.xlu0 %v62_v2  ;;  %v3624_v16 = vpack.c.bf16 %v111_v15, %v110_v14  ;;  %v112_v17 = vld [vmem:[%s4434_s3 + $0x10] sm:$0xff]  ;;  %v113_v18 = vld [vmem:[%s4434_s3 + $0x18] sm:$0xff]  ;;  %v202_v20 = vld [vmem:[%s4436_s5] sm:$0xff]  ;;  %s4453_s28 = sld [smem:[#allocation6_spill]]  ;;  %v3839_v48 = vmov 0.0   ;;  %vm3840_vm1 = vmmov 0   ;;  %v105_v2 = vlaneseq }
   0xc   :  { %v3628_v19 = vpack.c.bf16 %v113_v18, %v112_v17  ;;  %v203_v21 = vld [vmem:[%s4436_s5 + $0x8] sm:$0xff]  ;;  %v3082_v32 = vld [vmem:[%s4433_s2] ss:$0 sm:$0xff]  ;;  %v204_v37 = vld [vmem:[%s4436_s5 + $0x10] sm:$0xff]  ;;  %3389 = vmatprep.subr.mxu0 %v3839_v48  ;;  %3391 = vmatprep.mubr.msk.f32.mxu0 %vm3840_vm1, %v3839_v48  ;;  %vm374_vm2 = vcmask 64512   ;;  %s3841_s27 = smov [#allocation2]  }
   0xd   :  { %3625 = vmatprep.subr.bf16.mxu1 %v3624_v16  ;;  %v3632_v22 = vpack.c.bf16 %v203_v21, %v202_v20  ;;  %v205_v38 = vld [vmem:[%s4436_s5 + $0x18] sm:$0xff]  ;;  %v288_v42 = vld [vmem:[%s4438_s7] sm:$0xff]  ;;  %v289_v43 = vld [vmem:[%s4438_s7 + $0x8] sm:$0xff] }
   0xe   :  { %3627 = vmatpush3.bf16.msra.mxu1 %v3624_v16  ;;  %v3636_v41 = vpack.c.bf16 %v205_v38, %v204_v37  ;;  %v3640_v44 = vpack.c.bf16 %v289_v43, %v288_v42  ;;  %v290_v45 = vld [vmem:[%s4438_s7 + $0x10] sm:$0xff]  ;;  %v291_v46 = vld [vmem:[%s4438_s7 + $0x18] sm:$0xff]  ;;  %v3086_v51 = vld [vmem:[%s4437_s6] ss:$0 sm:$0xff] }
   0xf   :  { %66 = vadd.xlane.f32.xlu0 %v65_v3  ;;  %3629 = vmatprep.subr.bf16.mxu1 %v3628_v19  ;;  %v3644_v47 = vpack.c.bf16 %v291_v46, %v290_v45  ;;  %v3083_v54 = vld [vmem:[%s4435_s4] ss:$0 sm:$0xff]  ;;  %v106_v3 = vshrl.u32 %v105_v2, 7  ;;  %v3109_v42 = vld [vmem:[%s4436_s5 + $0x38] sm:$0xff] }
  0x10   :  { %v3089_v58 = vld [vmem:[%s4439_s8] ss:$0 sm:$0xff] }
  0x11   :  { %v3081_v30 = vld [vmem:[%s4453_s28] ss:$0 sm:$0xff] }
  0x12   :  { %3631 = vmatpush3.bf16.msra.mxu1 %v3628_v19  ;;  %v3114_v43 = vld [vmem:[%s4438_s7 + $0x20] sm:$0xff] }
  0x13   :  { %3633 = vmatprep.subr.bf16.mxu1 %v3632_v22 }
  0x98   :  { %v64_v4 = vpop.xlane.xlu0 %63 }
  0x99   :  { %v69_v5 = vmul.f32 0.03125, %v64_v4  ;;  %v108_v4 = vand.u32 127, %v105_v2  ;;  %v3119_v2 = vld [vmem:[%s4439_s8 + $0x1] ss:$0 sm:$0xff] }
  0x9b   :  { %v71_v6 = vsub.f32 %v3937_v0, %v69_v5  ;;  %vm4035_vm3 = vcmp.le.s32.totalorder %v108_v4, %v106_v3 }
  0x9c   :  { %v67_v7 = vpop.xlane.xlu0 %66 }
  0x9d   :  { %v70_v8 = vmul.f32 0.03125, %v67_v7  ;;  %v73_v9 = vmul.f32 %v71_v6, %v71_v6 }
  0x9f   :  { %v72_v10 = vsub.f32 %v3942_v1, %v70_v8  ;;  %v75_v11 = vsel %vm61_vm0, %v73_v9, 0.0 }
  0xa0   :  { %76 = vadd.xlane.f32.xlu1 %v75_v11 }
  0xa1   :  { %v74_v12 = vmul.f32 %v72_v10, %v72_v10 }
  0xa3   :  { %v78_v13 = vsel %vm61_vm0, %v74_v12, 0.0 }
  0xa4   :  { %79 = vadd.xlane.f32.xlu1 %v78_v13 }
 0x12d   :  { %v77_v23 = vpop.xlane.xlu1 %76 }
 0x12e   :  { %v81_v24 = vmul.f32 0.03125, %v77_v23 }
 0x130   :  { %v83_v25 = vadd.f32 1e-05, %v81_v24 }
 0x131   :  { %v80_v26 = vpop.xlane.xlu1 %79 }
 0x132   :  { %3771 = vrsqrt.f32 %v83_v25  ;;  %v82_v27 = vmul.f32 0.03125, %v80_v26  ;;  %v3098_v26 = vld [vmem:[%s4434_s3 + $0x20] sm:$0xff] }
 0x134   :  { %v84_v28 = vadd.f32 1e-05, %v82_v27  ;;  %v3099_v27 = vld [vmem:[%s4434_s3 + $0x28] sm:$0xff] }
 0x136   :  { %3773 = vrsqrt.f32 %v84_v28  ;;  %v3648_v28 = vpack.c.bf16 %v3099_v27, %v3098_v26 }
 0x13c   :  { %v3772_v29 = vpop.eup %3771 }
 0x13d   :  { %v87_v31 = vmul.f32 %v3772_v29, %v71_v6  ;;  %v3106_v29 = vld [vmem:[%s4436_s5 + $0x20] sm:$0xff] }
 0x13f   :  { %v95_v33 = vmul.f32 %v3081_v30, %v87_v31 }
 0x140   :  { %v3774_v34 = vpop.eup %3773 }
 0x141   :  { %v3976_v35 = vadd.f32 %v3082_v32, %v95_v33  ;;  %v88_v36 = vmul.f32 %v3774_v34, %v72_v10  ;;  %v3100_v34 = vld [vmem:[%s4434_s3 + $0x30] sm:$0xff] }
 0x143   :  { %v96_v39 = vmul.f32 %v3081_v30, %v88_v36  ;;  %3354 = vmatprep.mubr.msk.f32.mxu1 %vm61_vm0, %v3976_v35  ;;  %v3107_v30 = vld [vmem:[%s4436_s5 + $0x28] sm:$0xff]  ;;  %v3101_v36 = vld [vmem:[%s4434_s3 + $0x38] sm:$0xff] }
 0x144   :  { %v3656_v31 = vpack.c.bf16 %v3107_v30, %v3106_v29 }
 0x145   :  { %v3986_v40 = vadd.f32 %v3082_v32, %v96_v39  ;;  %v3652_v39 = vpack.c.bf16 %v3101_v36, %v3100_v34 }
 0x147   :  { %3355 = vmatmul.mubr.msk.f32.vlgmr.msra.gmra.mrb[0].mxu1 %vm61_vm0, %v3986_v40 }
 0x148   :  { %3635 = vmatpush3.bf16.msra.mxu1 %v3632_v22  ;;  %3365 = vmatprep.mubr.msk.f32.mxu1 %vm61_vm0, %v3976_v35 }
 0x149   :  { %3637 = vmatprep.subr.bf16.mxu1 %v3636_v41 }
 0x14c   :  { %3639 = vmatpush3.bf16.msra.mxu1 %v3636_v41  ;;  %v3108_v41 = vld [vmem:[%s4436_s5 + $0x30] sm:$0xff] }
 0x14d   :  { %3641 = vmatprep.subr.bf16.mxu1 %v3640_v44 }
 0x14f   :  { %3366 = vmatmul.mubr.msk.f32.vlgmr.msra.gmra.mrb[2].mxu1 %vm61_vm0, %v3986_v40 }
 0x150   :  { %3643 = vmatpush3.bf16.msra.mxu1 %v3640_v44  ;;  %3376 = vmatprep.mubr.msk.f32.mxu1 %vm61_vm0, %v3976_v35  ;;  %v3115_v44 = vld [vmem:[%s4438_s7 + $0x28] sm:$0xff] }
 0x151   :  { %3645 = vmatprep.subr.bf16.mxu1 %v3644_v47 }
 0x154   :  { %3647 = vmatpush3.bf16.msra.mxu1 %v3644_v47  ;;  %v3660_v47 = vpack.c.bf16 %v3109_v42, %v3108_v41  ;;  %v3136_v41 = vld [vmem:[%s4434_s3 + $0x58] sm:$0xff] }
 0x155   :  { %3379 = vmatprep.subr.mxu1 %v3839_v48 }
 0x157   :  { %3377 = vmatmul.mubr.msk.f32.vlgmr.msra.gmra.mrb[4].mxu1 %vm61_vm0, %v3986_v40 }
 0x158   :  { %3381 = vmatprep.mubr.msk.f32.mxu1 %vm3840_vm1, %v3839_v48 }
 0x21a   :  { %v3356_v49 = vpop.f32.mrb[0].mxu1 }
 0x21b   :  { %v193_v50 = vpop.f32.mrb[1].mxu1  ;;  %v199_v60 = vadd.f32 %v3356_v49, %v3083_v54  ;;  %v3664_v49 = vpack.c.bf16 %v3115_v44, %v3114_v43 }
 0x21c   :  { %v194_v56 = vadd.f32 %v3083_v54, %v193_v50  ;;  %v3116_v50 = vld [vmem:[%s4438_s7 + $0x30] sm:$0xff] }
 0x222   :  { %v3367_v52 = vpop.f32.mrb[2].mxu1 }
 0x223   :  { %v279_v53 = vpop.f32.mrb[3].mxu1  ;;  %v285_v57 = vadd.f32 %v3367_v52, %v3086_v51 }
 0x224   :  { %v280_v55 = vadd.f32 %v3086_v51, %v279_v53  ;;  %v3117_v51 = vld [vmem:[%s4438_s7 + $0x38] sm:$0xff] }
 0x225   :  { %v3668_v52 = vpack.c.bf16 %v3117_v51, %v3116_v50  ;;  %v3152_v50 = vld [vmem:[%s4438_s7 + $0x58] sm:$0xff] }
 0x226   :  { %3380 = vmatpush3.xpose.msk.msra.mxu1 %vm374_vm2, %v280_v55 }
 0x227   :  { %3384 = vmatprep.subr.mxu1 %v3839_v48 }
 0x229   :  { %3382 = vmatmul.mubr.msk.f32.vlgmr.msra.gmra.mrb[6].mxu1 %vm374_vm2, %v194_v56 }
 0x22a   :  { %v3378_v59 = vpop.f32.mrb[4].mxu1  ;;  %3385 = vmatpush3.xpose.msk.msra.mxu1 %vm374_vm2, %v285_v57  ;;  %3386 = vmatprep.mubr.msk.f32.mxu1 %vm3840_vm1, %v3839_v48 }
 0x22b   :  { %v371_v61 = vadd.f32 %v3378_v59, %v3089_v58  ;;  %v365_v62 = vpop.f32.mrb[5].mxu1  ;;  %3394 = vmatprep.subr.mxu1 %v3839_v48  ;;  %v3111_v59 = vld [vmem:[%s4437_s6 + $0x1] ss:$0 sm:$0xff] }
 0x22c   :  { %v366_v63 = vadd.f32 %v3089_v58, %v365_v62  ;;  %v3103_v62 = vld [vmem:[%s4435_s4 + $0x1] ss:$0 sm:$0xff] }
 0x22d   :  { %3387 = vmatmul.mubr.msk.f32.vlgmr.msra.gmra.mrb[8].mxu1 %vm374_vm2, %v199_v60 }
 0x22e   :  { %3390 = vmatpush3.msra.mxu0 %v366_v63  ;;  %3395 = vmatpush3.msra.mxu1 %v371_v61 }
 0x22f   :  { %3396 = vmatprep.mubr.msk.f32.mxu1 %vm3840_vm1, %v3839_v48  ;;  %3649 = vmatprep.subr.bf16.mxu0 %v3648_v28 }
 0x230   :  { %3657 = vmatprep.subr.bf16.mxu1 %v3656_v31 }
 0x2fc   :  { %v447_v5 = vpop.f32.mrb[6].mxu1 }
 0x2fd   :  { %v527_v7 = vmul.f32 0.35355338, %v447_v5  ;;  %v3383_v8 = vpop.f32.mrb[7].mxu1 }
 0x2ff   :  { %v529_v9 = vsel %vm4035_vm3, %v527_v7, -1e+30 }
 0x300   :  { %v523_v10 = vpop.f32.mrb[8].mxu1  ;;  %v531_v11 = vsel %vm374_vm2, %v529_v9, -inf }
 0x301   :  { %v528_v12 = vmul.f32 0.35355338, %v523_v10  ;;  %532 = vmax.xlane.f32.xlu1 %v531_v11  ;;  %v3388_v13 = vpop.f32.mrb[9].mxu1 }
 0x303   :  { %v530_v14 = vsel %vm4035_vm3, %v528_v12, -1e+30 }
 0x304   :  { %v534_v15 = vsel %vm374_vm2, %v530_v14, -inf }
 0x305   :  { %535 = vmax.xlane.f32.xlu0 %v534_v15 }
 0x38e   :  { %v533_v16 = vpop.xlane.xlu1 %532 }
 0x38f   :  { %v537_v17 = vsub.f32 %v529_v9, %v533_v16 }
 0x391   :  { %v539_v18 = vmul.f32 1.442695, %v537_v17 }
 0x392   :  { %v536_v19 = vpop.xlane.xlu0 %535 }
 0x393   :  { %3775 = vpow2.f32 %v539_v18  ;;  %v538_v20 = vsub.f32 %v530_v14, %v536_v19 }
 0x395   :  { %v541_v21 = vmul.f32 1.442695, %v538_v20 }
 0x397   :  { %3777 = vpow2.f32 %v541_v21 }
 0x39d   :  { %v3776_v22 = vpop.eup %3775 }
 0x39e   :  { %v543_v23 = vsel %vm374_vm2, %v3776_v22, 0.0 }
 0x39f   :  { %544 = vadd.xlane.f32.xlu1 %v543_v23 }
 0x3a1   :  { %v3778_v24 = vpop.eup %3777 }
 0x3a2   :  { %v546_v25 = vsel %vm374_vm2, %v3778_v24, 0.0 }
 0x3a3   :  { %547 = vadd.xlane.f32.xlu0 %v546_v25 }
 0x42c   :  { %v545_v32 = vpop.xlane.xlu1 %544 }
 0x42d   :  { %3779 = vrcp.f32 %v545_v32  ;;  %v3134_v32 = vld [vmem:[%s4434_s3 + $0x48] sm:$0xff] }
 0x430   :  { %v548_v33 = vpop.xlane.xlu0 %547 }
 0x431   :  { %3781 = vrcp.f32 %v548_v33 }
 0x437   :  { %v3780_v37 = vpop.eup %3779 }
 0x438   :  { %v551_v38 = vmul.f32 %v3780_v37, %v3776_v22 }
 0x43a   :  { %3392 = vmatmul.mubr.msk.f32.vlgmr.msra.gmra.mrb[0].mxu0 %vm374_vm2, %v551_v38 }
 0x43b   :  { %v3782_v45 = vpop.eup %3781  ;;  %3651 = vmatpush3.bf16.msra.mxu0 %v3648_v28  ;;  %3407 = vmatprep.mubr.msk.f32.mxu0 %vm61_vm0, %v3976_v35 }
 0x43c   :  { %v552_v46 = vmul.f32 %v3782_v45, %v3778_v24  ;;  %3653 = vmatprep.subr.bf16.mxu0 %v3652_v39  ;;  %v3149_v45 = vld [vmem:[%s4438_s7 + $0x40] sm:$0xff] }
 0x43e   :  { %3397 = vmatmul.mubr.msk.f32.vlgmr.msra.gmra.mrb[10].mxu1 %vm374_vm2, %v552_v46  ;;  %v3150_v46 = vld [vmem:[%s4438_s7 + $0x48] sm:$0xff] }
 0x43f   :  { %3655 = vmatpush3.bf16.msra.mxu0 %v3652_v39  ;;  %3659 = vmatpush3.bf16.msra.mxu1 %v3656_v31  ;;  %v3133_v31 = vld [vmem:[%s4434_s3 + $0x40] sm:$0xff]  ;;  %v3135_v39 = vld [vmem:[%s4434_s3 + $0x50] sm:$0xff] }
 0x440   :  { %3418 = vmatprep.mubr.msk.f32.mxu1 %vm61_vm0, %v3976_v35  ;;  %3661 = vmatprep.subr.bf16.mxu1 %v3660_v47  ;;  %v3672_v33 = vpack.c.bf16 %v3134_v32, %v3133_v31  ;;  %v3676_v44 = vpack.c.bf16 %v3136_v41, %v3135_v39  ;;  %v3166_v39 = vld [vmem:[%s4434_s3 + $0x60] sm:$0xff]  ;;  %v3167_v41 = vld [vmem:[%s4434_s3 + $0x68] sm:$0xff] }
 0x441   :  { %3665 = vmatprep.subr.bf16.mxu0 %v3664_v49 }
 0x442   :  { %3408 = vmatmul.mubr.msk.f32.vlgmr.msra.gmra.mrb[2].mxu0 %vm61_vm0, %v3986_v40 }
 0x443   :  { %3663 = vmatpush3.bf16.msra.mxu1 %v3660_v47  ;;  %3667 = vmatpush3.bf16.msra.mxu0 %v3664_v49  ;;  %v3688_v47 = vpack.c.bf16 %v3150_v46, %v3149_v45  ;;  %v3151_v49 = vld [vmem:[%s4438_s7 + $0x50] sm:$0xff] }
 0x444   :  { %3429 = vmatprep.mubr.msk.f32.mxu0 %vm61_vm0, %v3976_v35  ;;  %3669 = vmatprep.subr.bf16.mxu0 %v3668_v52  ;;  %v3692_v51 = vpack.c.bf16 %v3152_v50, %v3151_v49  ;;  %v3168_v46 = vld [vmem:[%s4434_s3 + $0x70] sm:$0xff] }
 0x445   :  { %3432 = vmatprep.subr.mxu1 %v3839_v48 }
 0x446   :  { %3419 = vmatmul.mubr.msk.f32.vlgmr.msra.gmra.mrb[12].mxu1 %vm61_vm0, %v3986_v40 }
 0x447   :  { %3671 = vmatpush3.bf16.msra.mxu0 %v3668_v52  ;;  %3434 = vmatprep.mubr.msk.f32.mxu1 %vm3840_vm1, %v3839_v48  ;;  %v3128_v52 = vld [vmem:[%s4440_s9 + $0x8] sm:$0xff] }
 0x448   :  { %3442 = vmatprep.subr.mxu0 %v3839_v48 }
 0x44a   :  { %3430 = vmatmul.mubr.msk.f32.vlgmr.msra.gmra.mrb[4].mxu0 %vm61_vm0, %v3986_v40 }
 0x44b   :  { %3444 = vmatprep.mubr.msk.f32.mxu0 %vm3840_vm1, %v3839_v48 }
 0x50d   :  { %v4103_v53 = vpop.f32.mrb[0].mxu0 }
 0x50e   :  { %v3393_v54 = vpop.f32.mrb[1].mxu0 }
 0x50f   :  { %v699_v54 = vld [vmem:[%s4440_s9] sm:$0xff] }
 0x511   :  { %v4105_v55 = vpop.f32.mrb[10].mxu1 }
 0x512   :  { %v3398_v56 = vpop.f32.mrb[11].mxu1 }
 0x515   :  { %v3409_v57 = vpop.f32.mrb[2].mxu0 }
 0x516   :  { %v779_v58 = vpop.f32.mrb[3].mxu0  ;;  %v785_v9 = vadd.f32 %v3409_v57, %v3103_v62  ;;  %v3141_v57 = vld [vmem:[%s4436_s5 + $0x40] sm:$0xff] }
 0x517   :  { %v780_v4 = vadd.f32 %v3103_v62, %v779_v58  ;;  %v3142_v58 = vld [vmem:[%s4436_s5 + $0x48] sm:$0xff] }
 0x519   :  { %v3420_v60 = vpop.f32.mrb[12].mxu1 }
 0x51a   :  { %v867_v61 = vpop.f32.mrb[13].mxu1  ;;  %v873_v7 = vadd.f32 %v3420_v60, %v3111_v59  ;;  %v3680_v60 = vpack.c.bf16 %v3142_v58, %v3141_v57  ;;  %v3183_v57 = vld [vmem:[%s4438_s7 + $0x68] sm:$0xff] }
 0x51b   :  { %v868_v63 = vadd.f32 %v3111_v59, %v867_v61 }
 0x51d   :  { %v3431_v3 = vpop.f32.mrb[4].mxu0  ;;  %3433 = vmatpush3.xpose.msk.msra.mxu1 %vm374_vm2, %v868_v63  ;;  %v3143_v63 = vld [vmem:[%s4436_s5 + $0x50] sm:$0xff] }
 0x51e   :  { %v955_v5 = vpop.f32.mrb[5].mxu0  ;;  %3437 = vmatprep.subr.mxu1 %v3839_v48  ;;  %v961_v10 = vadd.f32 %v3431_v3, %v3119_v2 }
 0x51f   :  { %v956_v8 = vadd.f32 %v3119_v2, %v955_v5  ;;  %v3144_v2 = vld [vmem:[%s4436_s5 + $0x58] sm:$0xff] }
 0x520   :  { %3435 = vmatmul.mubr.msk.f32.vlgmr.msra.gmra.mrb[14].mxu1 %vm374_vm2, %v780_v4  ;;  %v3684_v3 = vpack.c.bf16 %v3144_v2, %v3143_v63  ;;  %v3175_v63 = vld [vmem:[%s4436_s5 + $0x68] sm:$0xff] }
 0x521   :  { %3438 = vmatpush3.xpose.msk.msra.mxu1 %vm374_vm2, %v873_v7  ;;  %3443 = vmatpush3.msra.mxu0 %v956_v8 }
 0x522   :  { %3439 = vmatprep.mubr.msk.f32.mxu1 %vm3840_vm1, %v3839_v48  ;;  %3447 = vmatprep.subr.mxu1 %v3839_v48 }
 0x523   :  { %3452 = vmatprep.subr.mxu0 %v3128_v52 }
 0x524   :  { %3440 = vmatmul.mubr.msk.f32.vlgmr.msra.gmra.mrb[16].mxu1 %vm374_vm2, %v785_v9  ;;  %v3138_v9 = vld [vmem:[%s4435_s4 + $0x2] ss:$0 sm:$0xff] }
 0x525   :  { %3448 = vmatpush3.msra.mxu1 %v961_v10  ;;  %3449 = vmatprep.mubr.msk.f32.mxu1 %vm3840_vm1, %v3839_v48 }
 0x526   :  { %3673 = vmatprep.subr.bf16.mxu1 %v3672_v33 }
 0x5f3   :  { %v1036_v11 = vpop.f32.mrb[14].mxu1 }
 0x5f4   :  { %v1116_v12 = vmul.f32 0.35355338, %v1036_v11  ;;  %v3436_v13 = vpop.f32.mrb[15].mxu1 }
 0x5f6   :  { %v1118_v14 = vsel %vm4035_vm3, %v1116_v12, -1e+30  ;;  %v3154_v12 = vld [vmem:[%s4439_s8 + $0x2] ss:$0 sm:$0xff] }
 0x5f7   :  { %v1112_v15 = vpop.f32.mrb[16].mxu1  ;;  %v1120_v16 = vsel %vm374_vm2, %v1118_v14, -inf }
 0x5f8   :  { %v1117_v17 = vmul.f32 0.35355338, %v1112_v15  ;;  %1121 = vmax.xlane.f32.xlu0 %v1120_v16  ;;  %v3441_v18 = vpop.f32.mrb[17].mxu1 }
 0x5fa   :  { %v1119_v19 = vsel %vm4035_vm3, %v1117_v17, -1e+30 }
 0x5fb   :  { %v1123_v20 = vsel %vm374_vm2, %v1119_v19, -inf }
 0x5fc   :  { %1124 = vmax.xlane.f32.xlu1 %v1123_v20 }
 0x685   :  { %v1122_v21 = vpop.xlane.xlu0 %1121 }
 0x686   :  { %v1126_v22 = vsub.f32 %v1118_v14, %v1122_v21 }
 0x688   :  { %v1128_v23 = vmul.f32 1.442695, %v1126_v22 }
 0x689   :  { %v1125_v24 = vpop.xlane.xlu1 %1124 }
 0x68a   :  { %3783 = vpow2.f32 %v1128_v23  ;;  %v1127_v25 = vsub.f32 %v1119_v19, %v1125_v24 }
 0x68c   :  { %v1130_v26 = vmul.f32 1.442695, %v1127_v25 }
 0x68e   :  { %3785 = vpow2.f32 %v1130_v26 }
 0x694   :  { %v3784_v27 = vpop.eup %3783 }
 0x695   :  { %v1132_v28 = vsel %vm374_vm2, %v3784_v27, 0.0 }
 0x696   :  { %1133 = vadd.xlane.f32.xlu0 %v1132_v28 }
 0x698   :  { %v3786_v29 = vpop.eup %3785 }
 0x699   :  { %v1135_v30 = vsel %vm374_vm2, %v3786_v29, 0.0 }
 0x69a   :  { %1136 = vadd.xlane.f32.xlu1 %v1135_v30 }
 0x723   :  { %v1134_v34 = vpop.xlane.xlu0 %1133 }
 0x724   :  { %3787 = vrcp.f32 %v1134_v34 }
 0x727   :  { %v1137_v36 = vpop.xlane.xlu1 %1136 }
 0x728   :  { %3789 = vrcp.f32 %v1137_v36 }
 0x72e   :  { %v3788_v37 = vpop.eup %3787 }
 0x72f   :  { %v1140_v38 = vmul.f32 %v3788_v37, %v3784_v27 }
 0x731   :  { %3445 = vmatmul.mubr.msk.f32.vlgmr.msra.gmra.mrb[6].mxu0 %vm374_vm2, %v1140_v38 }
 0x732   :  { %v3790_v42 = vpop.eup %3789  ;;  %3453 = vmatpush3.msra.mxu0 %v3128_v52 }
 0x733   :  { %v1141_v43 = vmul.f32 %v3790_v42, %v3786_v29  ;;  %3457 = vmatprep.subr.mxu0 %v699_v54  ;;  %v3696_v42 = vpack.c.bf16 %v3167_v41, %v3166_v39 }
 0x735   :  { %3450 = vmatmul.mubr.msk.f32.vlgmr.msra.gmra.mrb[18].mxu1 %vm374_vm2, %v1141_v43  ;;  %v3163_v43 = vld [vmem:[%s4440_s9 + $0x10] sm:$0xff] }
 0x736   :  { %3675 = vmatpush3.bf16.msra.mxu1 %v3672_v33  ;;  %3470 = vmatprep.mubr.msk.f32.mxu1 %vm61_vm0, %v3976_v35 }
 0x737   :  { %3677 = vmatprep.subr.bf16.mxu1 %v3676_v44 }
 0x73a   :  { %3679 = vmatpush3.bf16.msra.mxu1 %v3676_v44 }
 0x73b   :  { %3689 = vmatprep.subr.bf16.mxu1 %v3688_v47 }
 0x73d   :  { %3471 = vmatmul.mubr.msk.f32.vlgmr.msra.gmra.mrb[20].mxu1 %vm61_vm0, %v3986_v40 }
 0x73e   :  { %3691 = vmatpush3.bf16.msra.mxu1 %v3688_v47  ;;  %3492 = vmatprep.mubr.msk.f32.mxu1 %vm61_vm0, %v3976_v35  ;;  %v3169_v47 = vld [vmem:[%s4434_s3 + $0x78] sm:$0xff] }
 0x73f   :  { %3693 = vmatprep.subr.bf16.mxu1 %v3692_v51  ;;  %v3700_v52 = vpack.c.bf16 %v3169_v47, %v3168_v46 }
 0x742   :  { %3695 = vmatpush3.bf16.msra.mxu1 %v3692_v51 }
 0x743   :  { %3500 = vmatprep.subr.mxu1 %v3839_v48 }
 0x745   :  { %3493 = vmatmul.mubr.msk.f32.vlgmr.msra.gmra.mrb[22].mxu1 %vm61_vm0, %v3986_v40 }
 0x746   :  { %3502 = vmatprep.mubr.msk.f32.mxu1 %vm3840_vm1, %v3839_v48 }
 0x804   :  { %v1211_v56 = vpop.f32.mrb[6].mxu0 }
 0x805   :  { %v3446_v59 = vpop.f32.mrb[7].mxu0  ;;  %3454 = vmatprep.mubr.msk.f32.mxu0 %vm374_vm2, %v1211_v56  ;;  %v3182_v56 = vld [vmem:[%s4438_s7 + $0x60] sm:$0xff] }
 0x806   :  { %v3712_v58 = vpack.c.bf16 %v3183_v57, %v3182_v56  ;;  %v3184_v59 = vld [vmem:[%s4438_s7 + $0x70] sm:$0xff]  ;;  %v3199_v57 = vld [vmem:[%s4441_s10] ss:$0 sm:$0xff] }
 0x808   :  { %v1284_v61 = vpop.f32.mrb[18].mxu1 }
 0x809   :  { %v3451_v62 = vpop.f32.mrb[19].mxu1  ;;  %3455 = vmatmul.mubr.msk.f32.vlgmr.msra.gmra.mrb[8].mxu0 %vm374_vm2, %v1284_v61 }
 0x80a   :  { %3458 = vmatpush3.msra.mxu0 %v699_v54  ;;  %3459 = vmatprep.mubr.msk.f32.mxu0 %vm374_vm2, %v4103_v53  ;;  %v3174_v62 = vld [vmem:[%s4436_s5 + $0x60] sm:$0xff] }
 0x80b   :  { %3681 = vmatprep.subr.bf16.mxu0 %v3680_v60  ;;  %v3704_v2 = vpack.c.bf16 %v3175_v63, %v3174_v62 }
 0x810   :  { %v3472_v4 = vpop.f32.mrb[20].mxu1 }
 0x811   :  { %v1531_v5 = vpop.f32.mrb[21].mxu1  ;;  %3460 = vmatmul.mubr.msk.f32.vlgmr.msra.gmra.mrb[8].mxu0 %vm374_vm2, %v4105_v55  ;;  %v3146_v55 = vld [vmem:[%s4437_s6 + $0x2] ss:$0 sm:$0xff]  ;;  %v1537_v14 = vadd.f32 %v3472_v4, %v3138_v9  ;;  %v3177_v4 = vld [vmem:[%s4436_s5 + $0x78] sm:$0xff] }
 0x812   :  { %3683 = vmatpush3.bf16.msra.mxu0 %v3680_v60  ;;  %3481 = vmatprep.mubr.msk.f32.mxu0 %vm61_vm0, %v3976_v35  ;;  %v1532_v15 = vadd.f32 %v3138_v9, %v1531_v5  ;;  %v3185_v60 = vld [vmem:[%s4438_s7 + $0x78] sm:$0xff] }
 0x813   :  { %3685 = vmatprep.subr.bf16.mxu0 %v3684_v3  ;;  %v3716_v61 = vpack.c.bf16 %v3185_v60, %v3184_v59 }
 0x816   :  { %3687 = vmatpush3.bf16.msra.mxu0 %v3684_v3  ;;  %v3176_v3 = vld [vmem:[%s4436_s5 + $0x70] sm:$0xff] }
 0x817   :  { %3495 = vmatprep.subr.mxu0 %v3839_v48 }
 0x818   :  { %v3494_v53 = vpop.f32.mrb[22].mxu1 }
 0x819   :  { %3482 = vmatmul.mubr.msk.f32.vlgmr.msra.gmra.mrb[10].mxu0 %vm61_vm0, %v3986_v40  ;;  %v1707_v7 = vpop.f32.mrb[23].mxu1  ;;  %v1713_v16 = vadd.f32 %v3494_v53, %v3154_v12 }
 0x81a   :  { %3497 = vmatprep.mubr.msk.f32.mxu0 %vm3840_vm1, %v3839_v48  ;;  %v1708_v17 = vadd.f32 %v3154_v12, %v1707_v7 }
 0x8ec   :  { %v3483_v8 = vpop.f32.mrb[10].mxu0 }
 0x8ed   :  { %v1625_v10 = vadd.f32 %v3483_v8, %v3146_v55  ;;  %v1619_v11 = vpop.f32.mrb[11].mxu0 }
 0x8ee   :  { %v1620_v13 = vadd.f32 %v3146_v55, %v1619_v11  ;;  %v3708_v55 = vpack.c.bf16 %v3177_v4, %v3176_v3  ;;  %v3187_v11 = vld [vmem:[%s4439_s8 + $0x3] ss:$0 sm:$0xff] }
 0x8ef   :  { %3501 = vmatpush3.xpose.msk.msra.mxu1 %vm374_vm2, %v1625_v10 }
 0x8f0   :  { %3496 = vmatpush3.xpose.msk.msra.mxu0 %vm374_vm2, %v1620_v13  ;;  %3510 = vmatprep.subr.mxu1 %v3839_v48 }
 0x8f1   :  { %3505 = vmatprep.subr.mxu0 %v3839_v48 }
 0x8f2   :  { %3503 = vmatmul.mubr.msk.f32.vlgmr.msra.gmra.mrb[24].mxu1 %vm374_vm2, %v1537_v14 }
 0x8f3   :  { %3498 = vmatmul.mubr.msk.f32.vlgmr.msra.gmra.mrb[12].mxu0 %vm374_vm2, %v1532_v15  ;;  %3511 = vmatpush3.msra.mxu1 %v1713_v16  ;;  %v3179_v15 = vld [vmem:[%s4437_s6 + $0x3] ss:$0 sm:$0xff] }
 0x8f4   :  { %3506 = vmatpush3.msra.mxu0 %v1708_v17  ;;  %3512 = vmatprep.mubr.msk.f32.mxu1 %vm3840_vm1, %v3839_v48 }
 0x8f5   :  { %3507 = vmatprep.mubr.msk.f32.mxu0 %vm3840_vm1, %v3839_v48  ;;  %3697 = vmatprep.subr.bf16.mxu1 %v3696_v42 }
 0x8f6   :  { %3515 = vmatprep.subr.mxu0 %v3163_v43 }
 0x9c5   :  { %v1864_v18 = vpop.f32.mrb[24].mxu1 }
 0x9c6   :  { %v1869_v19 = vmul.f32 0.35355338, %v1864_v18  ;;  %v1788_v20 = vpop.f32.mrb[12].mxu0  ;;  %v3504_v21 = vpop.f32.mrb[25].mxu1 }
 0x9c7   :  { %v1868_v22 = vmul.f32 0.35355338, %v1788_v20  ;;  %v3499_v23 = vpop.f32.mrb[13].mxu0 }
 0x9c8   :  { %v1871_v24 = vsel %vm4035_vm3, %v1869_v19, -1e+30 }
 0x9c9   :  { %v1875_v25 = vsel %vm374_vm2, %v1871_v24, -inf  ;;  %v1870_v26 = vsel %vm4035_vm3, %v1868_v22, -1e+30 }
 0x9ca   :  { %1876 = vmax.xlane.f32.xlu1 %v1875_v25  ;;  %v1872_v27 = vsel %vm374_vm2, %v1870_v26, -inf }
 0x9cb   :  { %1873 = vmax.xlane.f32.xlu0 %v1872_v27 }
 0xa57   :  { %v1877_v28 = vpop.xlane.xlu1 %1876 }
 0xa58   :  { %v1879_v29 = vsub.f32 %v1871_v24, %v1877_v28  ;;  %v1874_v30 = vpop.xlane.xlu0 %1873 }
 0xa59   :  { %v1878_v31 = vsub.f32 %v1870_v26, %v1874_v30 }
 0xa5a   :  { %v1882_v32 = vmul.f32 1.442695, %v1879_v29 }
 0xa5b   :  { %v1880_v33 = vmul.f32 1.442695, %v1878_v31 }
 0xa5c   :  { %3791 = vpow2.f32 %v1882_v32 }
 0xa5d   :  { %3793 = vpow2.f32 %v1880_v33 }
 0xa66   :  { %v3792_v34 = vpop.eup %3791 }
 0xa67   :  { %v3794_v36 = vpop.eup %3793  ;;  %v1887_v37 = vsel %vm374_vm2, %v3792_v34, 0.0 }
 0xa68   :  { %1888 = vadd.xlane.f32.xlu1 %v1887_v37  ;;  %v1884_v38 = vsel %vm374_vm2, %v3794_v36, 0.0 }
 0xa69   :  { %1885 = vadd.xlane.f32.xlu0 %v1884_v38 }
 0xaf5   :  { %v1889_v44 = vpop.xlane.xlu1 %1888 }
 0xaf6   :  { %3795 = vrcp.f32 %v1889_v44  ;;  %v1886_v45 = vpop.xlane.xlu0 %1885 }
 0xaf7   :  { %3797 = vrcp.f32 %v1886_v45 }
 0xb00   :  { %v3796_v49 = vpop.eup %3795 }
 0xb01   :  { %v3798_v50 = vpop.eup %3797  ;;  %v1893_v51 = vmul.f32 %v3796_v49, %v3792_v34  ;;  %v3196_v49 = vld [vmem:[%s4440_s9 + $0x18] sm:$0xff] }
 0xb02   :  { %v1892_v54 = vmul.f32 %v3798_v50, %v3794_v36 }
 0xb03   :  { %3513 = vmatmul.mubr.msk.f32.vlgmr.msra.gmra.mrb[26].mxu1 %vm374_vm2, %v1893_v51 }
 0xb04   :  { %3699 = vmatpush3.bf16.msra.mxu1 %v3696_v42  ;;  %3508 = vmatmul.mubr.msk.f32.vlgmr.msra.gmra.mrb[14].mxu0 %vm374_vm2, %v1892_v54 }
 0xb05   :  { %3528 = vmatprep.mubr.msk.f32.mxu1 %vm61_vm0, %v3976_v35  ;;  %3701 = vmatprep.subr.bf16.mxu1 %v3700_v52 }
 0xb06   :  { %3516 = vmatpush3.msra.mxu0 %v3163_v43 }
 0xb07   :  { %3705 = vmatprep.subr.bf16.mxu0 %v3704_v2 }
 0xb08   :  { %3703 = vmatpush3.bf16.msra.mxu1 %v3700_v52 }
 0xb09   :  { %3713 = vmatprep.subr.bf16.mxu1 %v3712_v58 }
 0xb0b   :  { %3529 = vmatmul.mubr.msk.f32.vlgmr.msra.gmra.mrb[28].mxu1 %vm61_vm0, %v3986_v40 }
 0xb0c   :  { %3715 = vmatpush3.bf16.msra.mxu1 %v3712_v58  ;;  %3550 = vmatprep.mubr.msk.f32.mxu1 %vm61_vm0, %v3976_v35 }
 0xb0d   :  { %3717 = vmatprep.subr.bf16.mxu1 %v3716_v61 }
 0xb10   :  { %3719 = vmatpush3.bf16.msra.mxu1 %v3716_v61 }
 0xb11   :  { %3563 = vmatprep.subr.mxu1 %v3839_v48 }
 0xb13   :  { %3551 = vmatmul.mubr.msk.f32.vlgmr.msra.gmra.mrb[30].mxu1 %vm61_vm0, %v3986_v40 }
 0xb14   :  { %3565 = vmatprep.mubr.msk.f32.mxu1 %vm3840_vm1, %v3839_v48 }
 0xbd6   :  { %v2036_v5 = vpop.f32.mrb[26].mxu1 }
 0xbd7   :  { %v1963_v53 = vpop.f32.mrb[14].mxu0  ;;  %v3514_v7 = vpop.f32.mrb[27].mxu1 }
 0xbd8   :  { %v3509_v8 = vpop.f32.mrb[15].mxu0  ;;  %3517 = vmatprep.mubr.msk.f32.mxu0 %vm374_vm2, %v1963_v53 }
 0xbd9   :  { %3518 = vmatmul.mubr.msk.f32.vlgmr.msra.gmra.mrb[8].mxu0 %vm374_vm2, %v2036_v5 }
 0xbda   :  { %3707 = vmatpush3.bf16.msra.mxu0 %v3704_v2  ;;  %3539 = vmatprep.mubr.msk.f32.mxu0 %vm61_vm0, %v3976_v35 }
 0xbdb   :  { %3709 = vmatprep.subr.bf16.mxu0 %v3708_v55 }
 0xbde   :  { %v3530_v9 = vpop.f32.mrb[28].mxu1  ;;  %3711 = vmatpush3.bf16.msra.mxu0 %v3708_v55 }
 0xbdf   :  { %v2204_v10 = vpop.f32.mrb[29].mxu1  ;;  %3553 = vmatprep.subr.mxu0 %v3839_v48 }
 0xbe1   :  { %3540 = vmatmul.mubr.msk.f32.vlgmr.msra.gmra.mrb[16].mxu0 %vm61_vm0, %v3986_v40  ;;  %v3171_v40 = vld [vmem:[%s4435_s4 + $0x3] ss:$0 sm:$0xff] }
 0xbe2   :  { %3555 = vmatprep.mubr.msk.f32.mxu0 %vm3840_vm1, %v3839_v48  ;;  %v2205_v19 = vadd.f32 %v3171_v40, %v2204_v10  ;;  %v2210_v21 = vadd.f32 %v3530_v9, %v3171_v40  ;;  %v2853_v10 = vld [vmem:[%s4444_s13] sm:$0xff] }
 0xbe6   :  { %v3552_v12 = vpop.f32.mrb[30].mxu1 }
 0xbe7   :  { %v2386_v13 = vadd.f32 %v3552_v12, %v3187_v11  ;;  %v2380_v14 = vpop.f32.mrb[31].mxu1 }
 0xbe8   :  { %v2381_v35 = vadd.f32 %v3187_v11, %v2380_v14  ;;  %v2854_v11 = vld [vmem:[%s4444_s13 + $0x8] sm:$0xff]  ;;  %v2856_v14 = vld [vmem:[%s4444_s13 + $0x18] sm:$0xff] }
 0xbe9   :  { %v3720_v12 = vpack.c.bf16 %v2854_v11, %v2853_v10 }
 0xbea   :  { %3564 = vmatpush3.msra.mxu1 %v2381_v35 }
 0xbeb   :  { %3721 = vmatprep.subr.bf16.mxu1 %v3720_v12 }
 0xcb4   :  { %v3541_v16 = vpop.f32.mrb[16].mxu0 }
 0xcb5   :  { %v2292_v17 = vpop.f32.mrb[17].mxu0  ;;  %v2298_v20 = vadd.f32 %v3541_v16, %v3179_v15  ;;  %v2964_v16 = vld [vmem:[%s4446_s15 + $0x8] sm:$0xff] }
 0xcb6   :  { %v2293_v18 = vadd.f32 %v3179_v15, %v2292_v17  ;;  %v2963_v15 = vld [vmem:[%s4446_s15] sm:$0xff] }
 0xcb7   :  { %v3728_v17 = vpack.c.bf16 %v2964_v16, %v2963_v15  ;;  %v3205_v16 = vld [vmem:[%s4447_s16] ss:$0 sm:$0xff] }
 0xcb8   :  { %3554 = vmatpush3.xpose.msk.msra.mxu0 %vm374_vm2, %v2293_v18 }
 0xcb9   :  { %3558 = vmatprep.subr.mxu0 %v3839_v48 }
 0xcbb   :  { %3556 = vmatmul.mubr.msk.f32.vlgmr.msra.gmra.mrb[18].mxu0 %vm374_vm2, %v2205_v19 }
 0xcbc   :  { %3559 = vmatpush3.xpose.msk.msra.mxu0 %vm374_vm2, %v2298_v20  ;;  %3560 = vmatprep.mubr.msk.f32.mxu0 %vm3840_vm1, %v3839_v48 }
 0xcbd   :  { %3568 = vmatprep.subr.mxu0 %v3839_v48 }
 0xcbf   :  { %3561 = vmatmul.mubr.msk.f32.vlgmr.msra.gmra.mrb[20].mxu0 %vm374_vm2, %v2210_v21 }
 0xcc0   :  { %3569 = vmatpush3.msra.mxu0 %v2386_v13  ;;  %3570 = vmatprep.mubr.msk.f32.mxu0 %vm3840_vm1, %v3839_v48  ;;  %v2855_v13 = vld [vmem:[%s4444_s13 + $0x10] sm:$0xff] }
 0xcc1   :  { %3573 = vmatprep.subr.mxu0 %v3196_v49  ;;  %v3724_v35 = vpack.c.bf16 %v2856_v14, %v2855_v13 }
 0xd8e   :  { %v2461_v22 = vpop.f32.mrb[18].mxu0 }
 0xd8f   :  { %v2541_v23 = vmul.f32 0.35355338, %v2461_v22  ;;  %v3557_v24 = vpop.f32.mrb[19].mxu0 }
 0xd90   :  { %v3200_v24 = vld [vmem:[%s4442_s11] ss:$0 sm:$0xff] }
 0xd91   :  { %v2543_v25 = vsel %vm4035_vm3, %v2541_v23, -1e+30 }
 0xd92   :  { %v2537_v26 = vpop.f32.mrb[20].mxu0  ;;  %v2545_v27 = vsel %vm374_vm2, %v2543_v25, -inf }
 0xd93   :  { %v2542_v28 = vmul.f32 0.35355338, %v2537_v26  ;;  %2546 = vmax.xlane.f32.xlu0 %v2545_v27  ;;  %v3562_v29 = vpop.f32.mrb[21].mxu0 }
 0xd95   :  { %v2544_v30 = vsel %vm4035_vm3, %v2542_v28, -1e+30  ;;  %v3201_v28 = vld [vmem:[%s4443_s12] ss:$0 sm:$0xff]  ;;  %s3070_s12 = sshll.u32 %s3841_s27, 4  ;;  %s3071_s12 = int_to_ptr.vmem [resolvable:$true] %s3070_s12 }
 0xd96   :  { %v2548_v31 = vsel %vm374_vm2, %v2544_v30, -inf  ;;  %s3815_s28 = scalar_lea.vmem %s3071_s12, 256  ;;  %p3820_p1 = scmp.lt.s32.totalorder %s3071_s12, %s3071_s12 }
 0xd97   :  { %2549 = vmax.xlane.f32.xlu1 %v2548_v31  ;;  %p3816_p0 = scmp.ne.s32.totalorder %s3071_s12, %s3815_s28  ;;  %p3821_p2 = scmp.lt.s32.totalorder %s3815_s28, %s3815_s28 }
 0xd99   :  { %p3822_p3 = por %p3821_p2, %p3820_p1 }
 0xd9b   :  { %p3823_p4 = pnand %p3822_p3, %p3816_p0 }
 0xe20   :  { %v2547_v32 = vpop.xlane.xlu0 %2546 }
 0xe21   :  { %v2551_v48 = vsub.f32 %v2543_v25, %v2547_v32 }
 0xe23   :  { %v2553_v33 = vmul.f32 1.442695, %v2551_v48  ;;  %v2965_v48 = vld [vmem:[%s4446_s15 + $0x10] sm:$0xff] }
 0xe24   :  { %v2550_v34 = vpop.xlane.xlu1 %2549 }
 0xe25   :  { %3799 = vpow2.f32 %v2553_v33  ;;  %v2552_v36 = vsub.f32 %v2544_v30, %v2550_v34  ;;  %v2966_v33 = vld [vmem:[%s4446_s15 + $0x18] sm:$0xff] }
 0xe26   :  { %v3732_v34 = vpack.c.bf16 %v2966_v33, %v2965_v48 }
 0xe27   :  { %v2555_v37 = vmul.f32 1.442695, %v2552_v36  ;;  %v2967_v36 = vld [vmem:[%s4446_s15 + $0x20] sm:$0xff] }
 0xe29   :  { %3801 = vpow2.f32 %v2555_v37  ;;  %v2968_v37 = vld [vmem:[%s4446_s15 + $0x28] sm:$0xff] }
 0xe2f   :  { %v3800_v38 = vpop.eup %3799 }
 0xe30   :  { %v2557_v39 = vsel %vm374_vm2, %v3800_v38, 0.0 }
 0xe31   :  { %2558 = vadd.xlane.f32.xlu0 %v2557_v39  ;;  %v2969_v39 = vld [vmem:[%s4446_s15 + $0x30] sm:$0xff] }
 0xe33   :  { %v3802_v41 = vpop.eup %3801 }
 0xe34   :  { %v2560_v42 = vsel %vm374_vm2, %v3802_v41, 0.0 }
 0xe35   :  { %2561 = vadd.xlane.f32.xlu1 %v2560_v42 }
 0xebe   :  { %v2559_v6 = vpop.xlane.xlu0 %2558 }
 0xebf   :  { %3803 = vrcp.f32 %v2559_v6  ;;  %v2971_v6 = vld [vmem:[%s4446_s15 + $0x40] sm:$0xff] }
 0xec2   :  { %v2562_v43 = vpop.xlane.xlu1 %2561 }
 0xec3   :  { %3805 = vrcp.f32 %v2562_v43  ;;  %v2972_v43 = vld [vmem:[%s4446_s15 + $0x48] sm:$0xff] }
 0xec9   :  { %v3804_v44 = vpop.eup %3803 }
 0xeca   :  { %v2565_v45 = vmul.f32 %v3804_v44, %v3800_v38  ;;  %v3736_v38 = vpack.c.bf16 %v2968_v37, %v2967_v36  ;;  %v2973_v44 = vld [vmem:[%s4446_s15 + $0x50] sm:$0xff] }
 0xecc   :  { %3566 = vmatmul.mubr.msk.f32.vlgmr.msra.gmra.mrb[32].mxu1 %vm374_vm2, %v2565_v45  ;;  %v3744_v45 = vpack.c.bf16 %v2972_v43, %v2971_v6 }
 0xecd   :  { %v3806_v46 = vpop.eup %3805  ;;  %3723 = vmatpush3.bf16.msra.mxu1 %v3720_v12 }
 0xece   :  { %v2566_v47 = vmul.f32 %v3806_v46, %v3802_v41  ;;  %3725 = vmatprep.subr.bf16.mxu1 %v3724_v35  ;;  %v2970_v41 = vld [vmem:[%s4446_s15 + $0x38] sm:$0xff] }
 0xecf   :  { %v3740_v42 = vpack.c.bf16 %v2970_v41, %v2969_v39  ;;  %v2974_v46 = vld [vmem:[%s4446_s15 + $0x58] sm:$0xff] }
 0xed0   :  { %3571 = vmatmul.mubr.msk.f32.vlgmr.msra.gmra.mrb[22].mxu0 %vm374_vm2, %v2566_v47  ;;  %v3748_v47 = vpack.c.bf16 %v2974_v46, %v2973_v44 }
 0xed1   :  { %3574 = vmatpush3.msra.mxu0 %v3196_v49  ;;  %3727 = vmatpush3.bf16.msra.mxu1 %v3724_v35  ;;  %v2975_v49 = vld [vmem:[%s4446_s15 + $0x60] sm:$0xff] }
 0xed2   :  { %3729 = vmatprep.subr.bf16.mxu0 %v3728_v17 }
 0xf9f   :  { %v2636_v50 = vpop.f32.mrb[32].mxu1 }
 0xfa0   :  { %v3567_v51 = vpop.f32.mrb[33].mxu1  ;;  %3575 = vmatprep.mubr.msk.f32.mxu0 %vm374_vm2, %v2636_v50  ;;  %v2976_v50 = vld [vmem:[%s4446_s15 + $0x68] sm:$0xff] }
 0xfa1   :  { %v3752_v51 = vpack.c.bf16 %v2976_v50, %v2975_v49 }
 0xfa3   :  { %v2709_v52 = vpop.f32.mrb[22].mxu0 }
 0xfa4   :  { %v3572_v54 = vpop.f32.mrb[23].mxu0  ;;  %3576 = vmatmul.mubr.msk.f32.vlgmr.msra.gmra.mrb[8].mxu0 %vm374_vm2, %v2709_v52  ;;  %v2977_v52 = vld [vmem:[%s4446_s15 + $0x70] sm:$0xff] }
 0xfa5   :  { %3731 = vmatpush3.bf16.msra.mxu0 %v3728_v17  ;;  %v2978_v54 = vld [vmem:[%s4446_s15 + $0x78] sm:$0xff] }
 0xfa6   :  { %3733 = vmatprep.subr.bf16.mxu0 %v3732_v34 }
 0xfa9   :  { %3735 = vmatpush3.bf16.msra.mxu0 %v3732_v34 }
 0xfaa   :  { %3737 = vmatprep.subr.bf16.mxu0 %v3736_v38 }
 0xfad   :  { %3739 = vmatpush3.bf16.msra.mxu0 %v3736_v38 }
 0xfae   :  { %3741 = vmatprep.subr.bf16.mxu0 %v3740_v42 }
 0xfb1   :  { %3743 = vmatpush3.bf16.msra.mxu0 %v3740_v42 }
 0xfb2   :  { %3745 = vmatprep.subr.bf16.mxu0 %v3744_v45 }
 0xfb5   :  { %3747 = vmatpush3.bf16.msra.mxu0 %v3744_v45 }
 0xfb6   :  { %3749 = vmatprep.subr.bf16.mxu0 %v3748_v47 }
 0xfb9   :  { %3751 = vmatpush3.bf16.msra.mxu0 %v3748_v47 }
 0xfba   :  { %3753 = vmatprep.subr.bf16.mxu0 %v3752_v51 }
 0xfbd   :  { %3755 = vmatpush3.bf16.msra.mxu0 %v3752_v51 }
0x1077   :  { %v3577_v56 = vpop.f32.mrb[8].mxu0 }
0x1078   :  { %v2799_v58 = vadd.f32 %v3577_v56, %v3942_v1  ;;  %v2787_v59 = vpop.f32.mrb[9].mxu0  ;;  %v3756_v56 = vpack.c.bf16 %v2978_v54, %v2977_v52 }
0x1079   :  { %v2798_v60 = vadd.f32 %v2787_v59, %v3937_v0 }
0x107a   :  { %v4329_v61 = vadd.f32 %v3199_v57, %v2799_v58  ;;  %3757 = vmatprep.subr.bf16.mxu0 %v3756_v56 }
0x107b   :  { %v4331_v62 = vadd.f32 %v3199_v57, %v2798_v60  ;;  %3759 = vmatpush3.bf16.msra.mxu0 %v3756_v56  ;;  %v3202_v57 = vld [vmem:[%s4445_s14] ss:$0 sm:$0xff] }
0x107c   :  { %v2814_v63 = vsel %vm61_vm0, %v4329_v61, 0.0 }
0x107d   :  { %2815 = vadd.xlane.f32.xlu1 %v2814_v63  ;;  %v2811_v2 = vsel %vm61_vm0, %v4331_v62, 0.0 }
0x107e   :  { %2812 = vadd.xlane.f32.xlu0 %v2811_v2 }
0x110a   :  { %v2816_v3 = vpop.xlane.xlu1 %2815 }
0x110b   :  { %v2818_v4 = vmul.f32 0.03125, %v2816_v3  ;;  %v2813_v5 = vpop.xlane.xlu0 %2812 }
0x110c   :  { %v2817_v53 = vmul.f32 0.03125, %v2813_v5 }
0x110d   :  { %v2820_v1 = vsub.f32 %v4329_v61, %v2818_v4 }
0x110e   :  { %v2819_v0 = vsub.f32 %v4331_v62, %v2817_v53 }
0x110f   :  { %v2822_v7 = vmul.f32 %v2820_v1, %v2820_v1 }
0x1110   :  { %v2821_v55 = vmul.f32 %v2819_v0, %v2819_v0 }
0x1111   :  { %v2826_v8 = vsel %vm61_vm0, %v2822_v7, 0.0 }
0x1112   :  { %2827 = vadd.xlane.f32.xlu1 %v2826_v8  ;;  %v2823_v9 = vsel %vm61_vm0, %v2821_v55, 0.0 }
0x1113   :  { %2824 = vadd.xlane.f32.xlu0 %v2823_v9 }
0x119f   :  { %v2828_v40 = vpop.xlane.xlu1 %2827 }
0x11a0   :  { %v2830_v18 = vmul.f32 0.03125, %v2828_v40  ;;  %v2825_v19 = vpop.xlane.xlu0 %2824 }
0x11a1   :  { %v2829_v20 = vmul.f32 0.03125, %v2825_v19 }
0x11a2   :  { %v2832_v21 = vadd.f32 1e-05, %v2830_v18 }
0x11a3   :  { %v2831_v22 = vadd.f32 1e-05, %v2829_v20 }
0x11a4   :  { %3807 = vrsqrt.f32 %v2832_v21 }
0x11a5   :  { %3809 = vrsqrt.f32 %v2831_v22 }
0x11ae   :  { %v3808_v23 = vpop.eup %3807 }
0x11af   :  { %v3810_v25 = vpop.eup %3809  ;;  %v2836_v26 = vmul.f32 %v3808_v23, %v2820_v1 }
0x11b0   :  { %v2835_v27 = vmul.f32 %v3810_v25, %v2819_v0 }
0x11b1   :  { %v2844_v29 = vmul.f32 %v3200_v24, %v2836_v26 }
0x11b2   :  { %v2843_v30 = vmul.f32 %v3200_v24, %v2835_v27 }
0x11b3   :  { %v2852_v32 = vadd.f32 %v3201_v28, %v2844_v29 }
0x11b4   :  { %v2851_v31 = vadd.f32 %v3201_v28, %v2843_v30 }
0x11b6   :  { %3586 = vmatprep.mubr.msk.f32.mxu1 %vm61_vm0, %v2851_v31 }
0x11b7   :  { %3587 = vmatmul.mubr.msk.f32.vlgmr.msra.gmra.mrb[34].mxu1 %vm61_vm0, %v2852_v32 }
0x128a   :  { %v3588_v58 = vpop.f32.mrb[34].mxu1 }
0x128b   :  { %v2942_v59 = vadd.f32 %v3588_v58, %v3202_v57  ;;  %v2936_v60 = vpop.f32.mrb[35].mxu1 }
0x128c   :  { %v2937_v63 = vadd.f32 %v3202_v57, %v2936_v60 }
0x128d   :  { %v2948_v2 = vmul.f32 0.044715, %v2942_v59  ;;  %v2946_v14 = vmul.f32 0.5, %v2942_v59 }
0x128e   :  { %v2947_v3 = vmul.f32 0.044715, %v2937_v63  ;;  %v2945_v12 = vmul.f32 0.5, %v2937_v63 }
0x128f   :  { %v2950_v4 = vmul.f32 %v2948_v2, %v2942_v59 }
0x1290   :  { %v2949_v5 = vmul.f32 %v2947_v3, %v2937_v63 }
0x1291   :  { %v2952_v53 = vmul.f32 %v2950_v4, %v2942_v59 }
0x1292   :  { %v2951_v1 = vmul.f32 %v2949_v5, %v2937_v63 }
0x1293   :  { %v2954_v0 = vadd.f32 %v2952_v53, %v2942_v59 }
0x1294   :  { %v2953_v7 = vadd.f32 %v2951_v1, %v2937_v63 }
0x1295   :  { %v2956_v55 = vmul.f32 0.7978846, %v2954_v0 }
0x1296   :  { %v2955_v8 = vmul.f32 0.7978846, %v2953_v7 }
0x1297   :  { %3811 = vtanh.f32 %v2956_v55 }
0x1298   :  { %3813 = vtanh.f32 %v2955_v8 }
0x12a1   :  { %v3812_v9 = vpop.eup %3811 }
0x12a2   :  { %v3814_v10 = vpop.eup %3813  ;;  %v2960_v11 = vadd.f32 1.0, %v3812_v9 }
0x12a3   :  { %v2959_v13 = vadd.f32 1.0, %v3814_v10 }
0x12a4   :  { %v2962_v15 = vmul.f32 %v2960_v11, %v2946_v14 }
0x12a5   :  { %v2961_v35 = vmul.f32 %v2959_v13, %v2945_v12 }
0x12a7   :  { %3621 = vmatprep.mubr.f32.mxu0 %v2961_v35 }
0x12a8   :  { %3622 = vmatmul.mubr.f32.vlgmr.msra.gmra.mrb[24].mxu0 %v2962_v15 }
0x137b   :  { %v3623_v17 = vpop.f32.mrb[24].mxu0 }
0x137c   :  { %v3058_v40 = vadd.f32 %v3623_v17, %v3205_v16  ;;  %v3052_v18 = vpop.f32.mrb[25].mxu0 }
0x137d   :  { %v3053_v19 = vadd.f32 %v3205_v16, %v3052_v18 }
0x137e   :  { %v3062_v20 = vadd.f32 %v3058_v40, %v4329_v61 }
0x137f   :  { %v3061_v21 = vadd.f32 %v3053_v19, %v4331_v62 }
0x1380   :  { %3064 = vst.msk [vmem:[#allocation2 + $0x8] sm:$0xff] %vm61_vm0, %v3062_v20 }
0x1381   :  { %3063 = vst.msk [vmem:[#allocation2] sm:$0xff] %vm61_vm0, %v3061_v21 }
0x1382   :  { %3826 = shalt.err (!%p3823_p4)
}
0x1383   :  { %s3827_s4 = scalar_lea.hbm %s4448_s17, 256 }
0x1384   :  { %p3828_p5 = scmp.ne.s32.totalorder %s4448_s17, %s3827_s4  ;;  %p3831_p6 = scmp.lt.u32.totalorder %s3827_s4, %s4448_s17 }
0x1386   :  { %p3833_p7 = pnand %p3831_p6, %p3828_p5 }
0x1388   :  { %3836 = shalt.err (!%p3833_p7)
}
0x1389   :  { %s3842_s10 = smov 128   ;;  %s3843_s3 = smov 8  }
0x138a   :  { %3076 = dma.vmem_to_hbm [thread:$0]  %s3071_s12, 256, %s4448_s17, [#allocation3], %s3842_s10, %s3842_s10, %s3843_s3  }
0x138b   :  { %3837 = dma.done.wait [#allocation3], 256  }
0x138c   :  { %3838 = vsyncadd [#allocation3], 4294967040 }
0x138d   :  { %3080 = vsyncpa [#allocation3], 1 }

</bundles_post_ra>
